<compile_context>
chip_gen: v5e
topology: v5e:2x2
jax: 0.10.0
libtpu: 0.0.40
codegen_flags: <defaults>
</compile_context>

<pallas_src>
import functools

import jax
import jax.numpy as jnp
from jax.experimental import pallas as pl
from jax.experimental.pallas import tpu as pltpu

ACT_DTYPE = jnp.bfloat16          # storage dtype for activations & matmul weights
_VMEM_LIMIT = 40 * 1024 * 1024    # raised scoped-VMEM cap (v5e default is 16 MiB)


# ----------------------------- tiling helpers ---------------------------------

def _round_up(x, m):
    return ((x + m - 1) // m) * m


def _largest_div(n, max_t, align):
    """Largest tile <= max_t, multiple of align, dividing n (n itself if small)."""
    if n <= max_t:
        return n
    start = max(align, max_t - max_t % align)
    for t in range(start, align - 1, -align):
        if n % t == 0:
            return t
    return align


def _pick_tile(size, max_tile, align):
    """Return (tile, padded_size).  Prefer exact divisors (zero padding); fall
    back to the aligned tile (>= max_tile//4) minimizing padding."""
    if size <= max_tile:
        return size, size
    start = max(align, max_tile - max_tile % align)
    for t in range(start, align - 1, -align):
        if size % t == 0:
            return t, size
    best_t, best_p = start, _round_up(size, start)
    lo = max(align, (max_tile // 4) // align * align)
    for t in range(start, lo - 1, -align):
        p = _round_up(size, t)
        if p < best_p:
            best_t, best_p = t, p
    return best_t, best_p


def _pad2(x, rows, cols):
    r, c = x.shape
    if (r, c) == (rows, cols):
        return x
    return jnp.pad(x, ((0, rows - r), (0, cols - c)))


# ----------------------------- matmul (+bias, +residual) ----------------------

def _matmul_kernel(x_ref, w_ref, b_ref, *rest, has_residual):
    if has_residual:
        res_ref, o_ref, acc_ref = rest
    else:
        o_ref, acc_ref = rest
        res_ref = None
    k = pl.program_id(2)

    @pl.when(k == 0)
    def _():
        acc_ref[...] = jnp.zeros(acc_ref.shape, acc_ref.dtype)

    acc_ref[...] += jnp.dot(x_ref[...], w_ref[...],
                            preferred_element_type=jnp.float32)

    @pl.when(k == pl.num_programs(2) - 1)
    def _():
        y = acc_ref[...] + b_ref[...]
        if has_residual:
            y = y + res_ref[...].astype(jnp.float32)
        o_ref[...] = y.astype(o_ref.dtype)


def matmul_bias(x, w, b, *, residual=None, out_dtype=None, tm=None,
                tm_max=512, tn_max=768, tk_max=1024):
    """x:(M,K) @ w:(K,N) + b (+ residual).  residual may be row-periodic
    (rows R with M % R == 0, e.g. embeddings broadcast over the batch)."""
    M, K = x.shape
    K2, N = w.shape
    assert K == K2 and b.shape == (N,)
    out_dtype = out_dtype or x.dtype
    if tm is None:
        tm, Mp = _pick_tile(M, tm_max, 8)
    else:
        Mp = _round_up(M, tm)
    tn, Np = _pick_tile(N, tn_max, 128)
    tk, Kp = _pick_tile(K, tk_max, 128)

    xp = _pad2(x, Mp, Kp).astype(ACT_DTYPE)
    wp = _pad2(w, Kp, Np).astype(ACT_DTYPE)
    bp = jnp.pad(b.astype(jnp.float32), (0, Np - N)).reshape(1, Np)

    in_specs = [
        pl.BlockSpec((tm, tk), lambda i, j, k: (i, k)),
        pl.BlockSpec((tk, tn), lambda i, j, k: (k, j)),
        pl.BlockSpec((1, tn), lambda i, j, k: (0, j)),
    ]
    args = [xp, wp, bp]
    if residual is not None:
        R = residual.shape[0]
        if R == M:
            rp = _pad2(residual, Mp, Np).astype(ACT_DTYPE)
            n_res = Mp // tm
        else:
            assert Mp == M and M % R == 0 and R % tm == 0
            rp = _pad2(residual, R, Np).astype(ACT_DTYPE)
            n_res = R // tm
        in_specs.append(pl.BlockSpec((tm, tn), lambda i, j, k: (i % n_res, j)))
        args.append(rp)

    kern = functools.partial(_matmul_kernel, has_residual=residual is not None)
    out = pl.pallas_call(
        kern,
        grid=(Mp // tm, Np // tn, Kp // tk),
        in_specs=in_specs,
        out_specs=pl.BlockSpec((tm, tn), lambda i, j, k: (i, j)),
        out_shape=jax.ShapeDtypeStruct((Mp, Np), out_dtype),
        scratch_shapes=[pltpu.VMEM((tm, tn), jnp.float32)],
        compiler_params=pltpu.CompilerParams(
            dimension_semantics=("parallel", "parallel", "arbitrary")),
        cost_estimate=pl.CostEstimate(
            flops=int(2 * Mp * Np * Kp),
            transcendentals=0,
            bytes_accessed=int(2 * (Mp * Kp + Kp * Np + 2 * Mp * Np))),
    )(*args)
    if (Mp, Np) != (M, N):
        out = out[:M, :N]
    return out


# ----------------------------- fused LayerNorm -> matmul ----------------------

def _ln_matmul_kernel(x_ref, g_ref, bt_ref, w_ref, b_ref, o_ref, xn_ref, *, eps):
    # LN of the row tile is computed once (j == 0) and cached in VMEM (bf16).
    @pl.when(pl.program_id(1) == 0)
    def _():
        x = x_ref[...].astype(jnp.float32)
        mu = jnp.mean(x, axis=-1, keepdims=True)
        xc = x - mu
        var = jnp.mean(xc * xc, axis=-1, keepdims=True)
        xn = xc * jax.lax.rsqrt(var + eps) * g_ref[...] + bt_ref[...]
        xn_ref[...] = xn.astype(xn_ref.dtype)

    acc = jnp.dot(xn_ref[...], w_ref[...], preferred_element_type=jnp.float32)
    o_ref[...] = (acc + b_ref[...]).astype(o_ref.dtype)


def ln_matmul_bias(x, gamma, beta, w, b, *, eps=1e-6, out_dtype=None,
                   tm_max=512, tn_max=768):
    M, K = x.shape
    K2, N = w.shape
    assert K == K2 and gamma.shape == (K,) and beta.shape == (K,) and b.shape == (N,)
    out_dtype = out_dtype or x.dtype
    tm, Mp = _pick_tile(M, tm_max, 8)
    tn, Np = _pick_tile(N, tn_max, 128)

    xp = _pad2(x, Mp, K).astype(ACT_DTYPE)
    wp = _pad2(w, K, Np).astype(ACT_DTYPE)
    bp = jnp.pad(b.astype(jnp.float32), (0, Np - N)).reshape(1, Np)
    g2 = gamma.astype(jnp.float32).reshape(1, K)
    bt2 = beta.astype(jnp.float32).reshape(1, K)

    out = pl.pallas_call(
        functools.partial(_ln_matmul_kernel, eps=eps),
        grid=(Mp // tm, Np // tn),
        in_specs=[
            pl.BlockSpec((tm, K), lambda i, j: (i, 0)),
            pl.BlockSpec((1, K), lambda i, j: (0, 0)),
            pl.BlockSpec((1, K), lambda i, j: (0, 0)),
            pl.BlockSpec((K, tn), lambda i, j: (0, j)),
            pl.BlockSpec((1, tn), lambda i, j: (0, j)),
        ],
        out_specs=pl.BlockSpec((tm, tn), lambda i, j: (i, j)),
        out_shape=jax.ShapeDtypeStruct((Mp, Np), out_dtype),
        scratch_shapes=[pltpu.VMEM((tm, K), ACT_DTYPE)],
        compiler_params=pltpu.CompilerParams(
            dimension_semantics=("parallel", "arbitrary")),
        cost_estimate=pl.CostEstimate(
            flops=int(2 * Mp * Np * K + 8 * Mp * K),
            transcendentals=int(Mp),
            bytes_accessed=int(2 * (Mp * K + K * Np + Mp * Np))),
    )(xp, g2, bt2, wp, bp)
    if (Mp, Np) != (M, N):
        out = out[:M, :N]
    return out


# ----------------------------- fused MLP (LN2 -> fc1 -> GELU -> fc2 -> +res) ---

def _mlp_kernel(x_ref, g_ref, bt_ref, w1_ref, b1_ref, w2_ref, b2_ref, res_ref,
                o_ref, xn_ref, acc_ref, *, eps):
    j = pl.program_id(1)

    @pl.when(j == 0)
    def _():
        x = x_ref[...].astype(jnp.float32)
        mu = jnp.mean(x, axis=-1, keepdims=True)
        xc = x - mu
        var = jnp.mean(xc * xc, axis=-1, keepdims=True)
        xn = xc * jax.lax.rsqrt(var + eps) * g_ref[...] + bt_ref[...]
        xn_ref[...] = xn.astype(xn_ref.dtype)
        acc_ref[...] = jnp.zeros(acc_ref.shape, acc_ref.dtype)

    h = jnp.dot(xn_ref[...], w1_ref[...], preferred_element_type=jnp.float32)
    h = h + b1_ref[...]
    # TODO(synk): PyTorch nn.GELU() is exact erf-GELU; tanh approximation used here.
    h = jax.nn.gelu(h, approximate=True)
    acc_ref[...] += jnp.dot(h.astype(w2_ref.dtype), w2_ref[...],
                            preferred_element_type=jnp.float32)

    @pl.when(j == pl.num_programs(1) - 1)
    def _():
        y = acc_ref[...] + b2_ref[...] + res_ref[...].astype(jnp.float32)
        o_ref[...] = y.astype(o_ref.dtype)


def mlp_block(x, gamma, beta, w1, b1, w2, b2, residual, *, eps=1e-6,
              tm_max=512, th_max=1024, out_dtype=None):
    """LayerNorm(x) -> fc1 -> GELU -> fc2 (+bias) + residual; hidden stays in VMEM."""
    M, D = x.shape
    D2, Hd = w1.shape
    assert D == D2 and w2.shape == (Hd, D) and residual.shape == (M, D)
    out_dtype = out_dtype or x.dtype
    tm, Mp = _pick_tile(M, tm_max, 8)
    th, Hp = _pick_tile(Hd, th_max, 128)

    xp = _pad2(x, Mp, D).astype(ACT_DTYPE)
    rp = _pad2(residual, Mp, D).astype(ACT_DTYPE)
    w1p = _pad2(w1, D, Hp).astype(ACT_DTYPE)
    b1p = jnp.pad(b1.astype(jnp.float32), (0, Hp - Hd)).reshape(1, Hp)
    w2p = _pad2(w2, Hp, D).astype(ACT_DTYPE)
    b2p = b2.astype(jnp.float32).reshape(1, D)
    g2 = gamma.astype(jnp.float32).reshape(1, D)
    bt2 = beta.astype(jnp.float32).reshape(1, D)

    out = pl.pallas_call(
        functools.partial(_mlp_kernel, eps=eps),
        grid=(Mp // tm, Hp // th),
        in_specs=[
            pl.BlockSpec((tm, D), lambda i, j: (i, 0)),
            pl.BlockSpec((1, D), lambda i, j: (0, 0)),
            pl.BlockSpec((1, D), lambda i, j: (0, 0)),
            pl.BlockSpec((D, th), lambda i, j: (0, j)),
            pl.BlockSpec((1, th), lambda i, j: (0, j)),
            pl.BlockSpec((th, D), lambda i, j: (j, 0)),
            pl.BlockSpec((1, D), lambda i, j: (0, 0)),
            pl.BlockSpec((tm, D), lambda i, j: (i, 0)),
        ],
        out_specs=pl.BlockSpec((tm, D), lambda i, j: (i, 0)),
        out_shape=jax.ShapeDtypeStruct((Mp, D), out_dtype),
        scratch_shapes=[pltpu.VMEM((tm, D), ACT_DTYPE),
                        pltpu.VMEM((tm, D), jnp.float32)],
        compiler_params=pltpu.CompilerParams(
            dimension_semantics=("parallel", "arbitrary"),
            vmem_limit_bytes=_VMEM_LIMIT),
        cost_estimate=pl.CostEstimate(
            flops=int(4 * Mp * D * Hp + 8 * Mp * D),
            transcendentals=int(Mp * Hp + Mp),
            bytes_accessed=int(2 * (3 * Mp * D + 2 * D * Hp))),
    )(xp, g2, bt2, w1p, b1p, w2p, b2p, rp)
    if Mp != M:
        out = out[:M]
    return out


# ----------------------------- attention ---------------------------------------

def _attn_kernel(q_ref, k_ref, v_ref, o_ref, *, hpb, dh, scale, s_valid,
                 q_off, k_off, v_off):
    tq = q_ref.shape[0]
    skv = k_ref.shape[0]
    kmask = jax.lax.broadcasted_iota(jnp.int32, (tq, skv), 1) < s_valid
    outs = []
    for h in range(hpb):                      # unrolled head loop inside the group
        q = (q_ref[:, q_off + h * dh: q_off + (h + 1) * dh].astype(jnp.float32)
             * scale).astype(k_ref.dtype)     # fold 1/sqrt(Dh) into q (tq x dh muls)
        k = k_ref[:, k_off + h * dh: k_off + (h + 1) * dh]
        v = v_ref[:, v_off + h * dh: v_off + (h + 1) * dh]
        s = jax.lax.dot_general(q, k, (((1,), (1,)), ((), ())),
                                preferred_element_type=jnp.float32)   # (tq, S_p)
        s = jnp.where(kmask, s, -1e30)
        m = jnp.max(s, axis=-1, keepdims=True)
        p = jnp.exp(s - m)
        l = jnp.sum(p, axis=-1, keepdims=True)
        o = jnp.dot(p.astype(v.dtype), v, preferred_element_type=jnp.float32)
        outs.append(o * (1.0 / l))
    o = outs[0] if len(outs) == 1 else jnp.concatenate(outs, axis=-1)
    o_ref[...] = o.astype(o_ref.dtype)


def attention(qkv, B, S_p, S_valid, nH, Dh, *, out_dtype=ACT_DTYPE, tq_max=512):
    """Joint space-time attention reading directly from the (B*S_p, 3D) QKV
    buffer (head-group BlockSpecs) and writing head-merged (B*S_p, D) output."""
    Mp, threeD = qkv.shape
    D = nH * Dh
    assert threeD == 3 * D and Mp == B * S_p
    scale = float(Dh) ** -0.5

    hpb = None
    for wg in (256, 128):                     # lane-dense head groups (v6e/v7x MXU width)
        gpb = wg // Dh
        if wg % Dh == 0 and gpb >= 1 and nH % gpb == 0 and D % wg == 0:
            hpb = gpb
            break
    if hpb is not None:
        blk_w = hpb * Dh
        n_g = nH // hpb
        q_col, k_col, v_col = 0, D // blk_w, 2 * D // blk_w
        q_off = k_off = v_off = 0
    else:
        # small-head fallback (tiny configs): full q|k|v width per step
        hpb, n_g, blk_w = nH, 1, 3 * D
        q_col = k_col = v_col = 0
        q_off, k_off, v_off = 0, D, 2 * D
    ow = hpb * Dh

    tq = _largest_div(S_p, tq_max, 8)
    n_q = S_p // tq

    q_spec = pl.BlockSpec((tq, blk_w), lambda b, g, qi: (b * n_q + qi, q_col + g))
    k_spec = pl.BlockSpec((S_p, blk_w), lambda b, g, qi: (b, k_col + g))
    v_spec = pl.BlockSpec((S_p, blk_w), lambda b, g, qi: (b, v_col + g))
    o_spec = pl.BlockSpec((tq, ow), lambda b, g, qi: (b * n_q + qi, g))

    kern = functools.partial(_attn_kernel, hpb=hpb, dh=Dh, scale=scale,
                             s_valid=S_valid, q_off=q_off, k_off=k_off, v_off=v_off)
    out = pl.pallas_call(
        kern,
        grid=(B, n_g, n_q),
        in_specs=[q_spec, k_spec, v_spec],
        out_specs=o_spec,
        out_shape=jax.ShapeDtypeStruct((Mp, D), out_dtype),
        compiler_params=pltpu.CompilerParams(
            dimension_semantics=("parallel", "parallel", "parallel"),
            vmem_limit_bytes=_VMEM_LIMIT),
        cost_estimate=pl.CostEstimate(
            flops=int(4 * B * nH * S_p * S_p * Dh),
            transcendentals=int(B * nH * S_p * S_p),
            bytes_accessed=int(2 * (Mp * 3 * D + Mp * D))),
    )(qkv, qkv, qkv)
    return out


# ----------------------------- LayerNorm ---------------------------------------

def _layernorm_kernel(x_ref, g_ref, b_ref, o_ref, *, eps):
    x = x_ref[...].astype(jnp.float32)
    mu = jnp.mean(x, axis=-1, keepdims=True)
    xc = x - mu
    var = jnp.mean(xc * xc, axis=-1, keepdims=True)
    y = xc * jax.lax.rsqrt(var + eps) * g_ref[...] + b_ref[...]
    o_ref[...] = y.astype(o_ref.dtype)


def layernorm(x, gamma, beta, *, eps=1e-6, tm_max=256, out_dtype=None):
    M, D = x.shape
    out_dtype = out_dtype or x.dtype
    tm, Mp = _pick_tile(M, tm_max, 8)
    xp = x if Mp == M else jnp.pad(x, ((0, Mp - M), (0, 0)))
    out = pl.pallas_call(
        functools.partial(_layernorm_kernel, eps=eps),
        grid=(Mp // tm,),
        in_specs=[
            pl.BlockSpec((tm, D), lambda i: (i, 0)),
            pl.BlockSpec((1, D), lambda i: (0, 0)),
            pl.BlockSpec((1, D), lambda i: (0, 0)),
        ],
        out_specs=pl.BlockSpec((tm, D), lambda i: (i, 0)),
        out_shape=jax.ShapeDtypeStruct((Mp, D), out_dtype),
        compiler_params=pltpu.CompilerParams(dimension_semantics=("parallel",)),
    )(xp, gamma.astype(jnp.float32).reshape(1, D),
      beta.astype(jnp.float32).reshape(1, D))
    return out if Mp == M else out[:M]


# ----------------------------- Model (glue + params) --------------------------

def init_params(key, cfg):
    D = cfg["embed_dim"]
    P = cfg["patch_size"]
    C = cfg["in_chans"]
    T = cfg["num_frames"]
    G = cfg["img_size"] // P
    N = G * G
    depth = cfg["depth"]
    hidden = D * cfg["mlp_ratio"]
    std = 0.02
    keys = jax.random.split(key, 8 + depth)

    def nrm(k, shape, dtype=jnp.float32):
        return (std * jax.random.normal(k, shape)).astype(dtype)

    params = {
        # Conv2d(C, D, P, stride=P) expressed as matmul: weight flattened (C*P*P, D)
        "patch_w": nrm(keys[0], (C * P * P, D), ACT_DTYPE),
        "patch_b": jnp.zeros((D,), jnp.float32),
        "cls_token": nrm(keys[1], (1, 1, D)),
        "resPrompt_token": nrm(keys[2], (1, 1, D)),
        "pos_embed": nrm(keys[3], (1, 1 + T * N, D)),
        "time_embed": nrm(keys[4], (1, T, D)),
        "norm_g": jnp.ones((D,), jnp.float32),
        "norm_b": jnp.zeros((D,), jnp.float32),
        "head_w": nrm(keys[5], (D, cfg["actual_num_classes"]), ACT_DTYPE),
        "head_b": jnp.zeros((cfg["actual_num_classes"],), jnp.float32),
    }
    blocks = []
    for d in range(depth):
        bk = jax.random.split(keys[8 + d], 4)
        blocks.append({
            "ln1_g": jnp.ones((D,), jnp.float32), "ln1_b": jnp.zeros((D,), jnp.float32),
            "qkv_w": nrm(bk[0], (D, 3 * D), ACT_DTYPE), "qkv_b": jnp.zeros((3 * D,), jnp.float32),
            "proj_w": nrm(bk[1], (D, D), ACT_DTYPE), "proj_b": jnp.zeros((D,), jnp.float32),
            "ln2_g": jnp.ones((D,), jnp.float32), "ln2_b": jnp.zeros((D,), jnp.float32),
            "fc1_w": nrm(bk[2], (D, hidden), ACT_DTYPE), "fc1_b": jnp.zeros((hidden,), jnp.float32),
            "fc2_w": nrm(bk[3], (hidden, D), ACT_DTYPE), "fc2_b": jnp.zeros((D,), jnp.float32),
        })
    params["blocks"] = blocks
    return params


def vit_forward(params, x, cfg):
    B, C, T, H, W = x.shape
    P = cfg["patch_size"]
    D = cfg["embed_dim"]
    nH = cfg["num_heads"]
    Gh, Gw = H // P, W // P
    N = Gh * Gw
    Dh = D // nH

    # --- Patch embedding: Conv2d(C, D, P, stride=P) as im2col + matmul.
    # Cast to bf16 BEFORE the im2col transpose (halves HBM traffic of the reshuffle).
    xb = x.astype(ACT_DTYPE)
    xt = jnp.transpose(xb, (0, 2, 1, 3, 4)).reshape(B * T, C, H, W)
    patches = xt.reshape(B * T, C, Gh, P, Gw, P)
    patches = jnp.transpose(patches, (0, 2, 4, 1, 3, 5)).reshape(B * T * N, C * P * P)

    # pos_embed + time_embed folded into the patch-embed epilogue (row-periodic residual)
    embeds = (params["pos_embed"][0, 1:, :]
              + jnp.repeat(params["time_embed"][0], N, axis=0)).astype(ACT_DTYPE)   # (T*N, D)
    tm_pe = _largest_div(T * N, 512, 8)
    tok = matmul_bias(patches, params["patch_w"], params["patch_b"],
                      residual=embeds, tm=tm_pe, out_dtype=ACT_DTYPE)               # (B*T*N, D)
    tok = tok.reshape(B, T * N, D)

    cls = jnp.broadcast_to((params["cls_token"] + params["pos_embed"][:, :1, :]
                            ).astype(ACT_DTYPE), (B, 1, D))
    prompt = jnp.broadcast_to(params["resPrompt_token"].astype(ACT_DTYPE), (B, 1, D))
    xs = jnp.concatenate([prompt, cls, tok], axis=1)                                # (B, S, D)
    S = xs.shape[1]

    # pad the sequence ONCE; activations stay padded & bf16 for all 12 blocks
    S_p = _round_up(S, 128) if S > 256 else _round_up(S, 8)
    if S_p != S:
        xs = jnp.pad(xs, ((0, 0), (0, S_p - S), (0, 0)))
    xf = xs.reshape(B * S_p, D)

    # --- depth x pre-LN transformer block, joint space-time attention ---
    for p in params["blocks"]:
        # LN1 fused into the QKV projection (LN cached per row tile, computed once)
        qkv = ln_matmul_bias(xf, p["ln1_g"], p["ln1_b"], p["qkv_w"], p["qkv_b"],
                             out_dtype=ACT_DTYPE)                                   # (B*S_p, 3D)
        # attention reads heads straight from qkv and writes head-merged output
        attn = attention(qkv, B, S_p, S, nH, Dh)                                    # (B*S_p, D)
        # output projection with fused bias + residual (DropPath = identity, eval)
        xf = matmul_bias(attn, p["proj_w"], p["proj_b"], residual=xf,
                         out_dtype=ACT_DTYPE)
        # fused LN2 -> fc1 -> GELU -> fc2 -> +residual (hidden never hits HBM)
        xf = mlp_block(xf, p["ln2_g"], p["ln2_b"], p["fc1_w"], p["fc1_b"],
                       p["fc2_w"], p["fc2_b"], residual=xf, out_dtype=ACT_DTYPE)

    # final LayerNorm only on the resPrompt (row 0) and cls (row 1) tokens
    lead = xf.reshape(B, S_p, D)[:, :2, :].reshape(B * 2, D)
    xn = layernorm(lead, params["norm_g"], params["norm_b"],
                   out_dtype=jnp.float32).reshape(B, 2, D)
    x_resPrompt = matmul_bias(xn[:, 0, :], params["head_w"], params["head_b"],
                              out_dtype=jnp.float32)
    x_feats = xn[:, 1, :]
    return x_resPrompt, x_feats


def model_forward(params, x, cfg, return_tokens=False):
    """Mirrors vit_base_patch16_224_base_lin.forward (inference)."""
    x_resPrompt, x_feats = vit_forward(params, x, cfg)
    if return_tokens:
        return x_resPrompt, x_feats
    return x_resPrompt


# ----------------------------- main --------------------------------------------

if __name__ == "__main__":
    # Small synthetic config consistent with the module's structure
    # (real model: img 224, patch 16, D=768, depth=12, heads=12, T frames).
    cfg = dict(
        img_size=32, patch_size=16, in_chans=3,
        embed_dim=32, depth=2, num_heads=4, mlp_ratio=4,
        num_frames=2, actual_num_classes=10,
    )
    key = jax.random.PRNGKey(0)
    pkey, xkey = jax.random.split(key)
    params = init_params(pkey, cfg)
    x = jax.random.normal(
        xkey, (2, cfg["in_chans"], cfg["num_frames"], cfg["img_size"], cfg["img_size"]),
        dtype=jnp.float32)

    fwd = jax.jit(lambda p, inp: model_forward(p, inp, cfg))
    out = jax.block_until_ready(fwd(params, x))   # default path returns x_resPrompt
    assert out.shape == (2, cfg["actual_num_classes"]) and out.dtype == jnp.float32
    print("KERNEL_OK")
</pallas_src>

<mosaic_0001>
module attributes {stable_mosaic.version = 11 : i64} {
  func.func @_matmul_kernel(%arg0: i32, %arg1: i32, %arg2: i32, %arg3: memref<8x768xbf16, #tpu.memory_space<vmem>>, %arg4: memref<768x32xbf16, #tpu.memory_space<vmem>>, %arg5: memref<1x32xf32, #tpu.memory_space<vmem>>, %arg6: memref<8x32xbf16, #tpu.memory_space<vmem>>, %arg7: memref<8x32xbf16, #tpu.memory_space<vmem>>, %arg8: memref<8x32xf32, #tpu.memory_space<vmem>>) attributes {dimension_semantics = [#tpu.dimension_semantics<parallel>, #tpu.dimension_semantics<parallel>, #tpu.dimension_semantics<arbitrary>], iteration_bounds = array<i64: 2, 1, 1>, scalar_prefetch = 0 : i64, scratch_operands = 1 : i64, tpu.core_type = #tpu.core_type<tc>, window_params = [{transform_indices = @transform_0, window_bounds = array<i64: 8, 768>}, {transform_indices = @transform_1, window_bounds = array<i64: 768, 32>}, {transform_indices = @transform_2, window_bounds = array<i64: 1, 32>}, {transform_indices = @transform_3, window_bounds = array<i64: 8, 32>}, {transform_indices = @transform_4, window_bounds = array<i64: 8, 32>}]} {
    %c0_i32 = arith.constant 0 : i32
    %0 = arith.cmpi eq, %arg2, %c0_i32 : i32
    %1 = arith.extui %0 : i1 to i32
    %c0_i32_0 = arith.constant 0 : i32
    %2 = arith.cmpi ne, %1, %c0_i32_0 : i32
    scf.if %2 {
      %cst_10 = arith.constant 0.000000e+00 : f32
      %12 = vector.broadcast %cst_10 : f32 to vector<8x32xf32>
      %c0_11 = arith.constant 0 : index
      %c0_12 = arith.constant 0 : index
      %13 = vector.load %arg8[%c0_11, %c0_12] : memref<8x32xf32, #tpu.memory_space<vmem>>, vector<8x32xf32>
      tpu.vector_store %arg8[%c0_11, %c0_12], %12 {strides = array<i32>} : memref<8x32xf32, #tpu.memory_space<vmem>>, vector<8x32xf32>,
    } else {
    }
    %c0 = arith.constant 0 : index
    %c0_1 = arith.constant 0 : index
    %3 = vector.load %arg8[%c0, %c0_1] : memref<8x32xf32, #tpu.memory_space<vmem>>, vector<8x32xf32>
    %c0_2 = arith.constant 0 : index
    %c0_3 = arith.constant 0 : index
    %4 = vector.load %arg3[%c0_2, %c0_3] : memref<8x768xbf16, #tpu.memory_space<vmem>>, vector<8x768xbf16>
    %c0_4 = arith.constant 0 : index
    %c0_5 = arith.constant 0 : index
    %5 = vector.load %arg4[%c0_4, %c0_5] : memref<768x32xbf16, #tpu.memory_space<vmem>>, vector<768x32xbf16>
    %cst = arith.constant dense<0.000000e+00> : vector<8x32xf32>
    %6 = tpu.matmul %4, %5, %cst {dimension_numbers = #tpu.dot_dimension_numbers<[1], [0], [0], [1], [0, 0, 1, 1], [], []>} : vector<8x768xbf16>, vector<768x32xbf16>, vector<8x32xf32> -> vector<8x32xf32>
    %7 = arith.addf %3, %6 : vector<8x32xf32>
    %c0_6 = arith.constant 0 : index
    %c0_7 = arith.constant 0 : index
    %8 = vector.load %arg8[%c0_6, %c0_7] : memref<8x32xf32, #tpu.memory_space<vmem>>, vector<8x32xf32>
    tpu.vector_store %arg8[%c0_6, %c0_7], %7 {strides = array<i32>} : memref<8x32xf32, #tpu.memory_space<vmem>>, vector<8x32xf32>,
    %c0_i32_8 = arith.constant 0 : i32
    %9 = arith.cmpi eq, %arg2, %c0_i32_8 : i32
    %10 = arith.extui %9 : i1 to i32
    %c0_i32_9 = arith.constant 0 : i32
    %11 = arith.cmpi ne, %10, %c0_i32_9 : i32
    scf.if %11 {
      %c0_10 = arith.constant 0 : index
      %c0_11 = arith.constant 0 : index
      %12 = vector.load %arg8[%c0_10, %c0_11] : memref<8x32xf32, #tpu.memory_space<vmem>>, vector<8x32xf32>
      %c0_12 = arith.constant 0 : index
      %c0_13 = arith.constant 0 : index
      %13 = vector.load %arg5[%c0_12, %c0_13] : memref<1x32xf32, #tpu.memory_space<vmem>>, vector<1x32xf32>
      %14 = vector.broadcast %13 : vector<1x32xf32> to vector<8x32xf32>
      %15 = arith.addf %12, %14 : vector<8x32xf32>
      %c0_14 = arith.constant 0 : index
      %c0_15 = arith.constant 0 : index
      %16 = vector.load %arg6[%c0_14, %c0_15] : memref<8x32xbf16, #tpu.memory_space<vmem>>, vector<8x32xbf16>
      %17 = arith.extf %16 : vector<8x32xbf16> to vector<8x32xf32>
      %18 = arith.addf %15, %17 : vector<8x32xf32>
      %19 = arith.truncf %18 : vector<8x32xf32> to vector<8x32xbf16>
      %c0_16 = arith.constant 0 : index
      %c0_17 = arith.constant 0 : index
      %20 = vector.load %arg7[%c0_16, %c0_17] : memref<8x32xbf16, #tpu.memory_space<vmem>>, vector<8x32xbf16>
      tpu.vector_store %arg7[%c0_16, %c0_17], %19 {strides = array<i32>} : memref<8x32xbf16, #tpu.memory_space<vmem>>, vector<8x32xbf16>,
    } else {
    }
    return
  }
  func.func @transform_0(%arg0: i32, %arg1: i32, %arg2: i32) -> (i32, i32) {
    %c0_i32 = arith.constant 0 : i32
    return %arg0, %arg2 : i32, i32
  }
  func.func @transform_1(%arg0: i32, %arg1: i32, %arg2: i32) -> (i32, i32) {
    %c0_i32 = arith.constant 0 : i32
    return %arg2, %arg1 : i32, i32
  }
  func.func @transform_2(%arg0: i32, %arg1: i32, %arg2: i32) -> (i32, i32) {
    %c0_i32 = arith.constant 0 : i32
    %c0_i32_0 = arith.constant 0 : i32
    return %c0_i32, %arg1 : i32, i32
  }
  func.func @transform_3(%arg0: i32, %arg1: i32, %arg2: i32) -> (i32, i32) {
    %c1_i32 = arith.constant 1 : i32
    %c0_i32 = arith.constant 0 : i32
    %0 = arith.cmpi eq, %c1_i32, %c0_i32 : i32
    %c1_i32_0 = arith.constant 1 : i32
    %1 = arith.select %0, %c1_i32_0, %c1_i32 : i32
    %2 = arith.remsi %arg0, %1 : i32
    %c0_i32_1 = arith.constant 0 : i32
    %3 = arith.cmpi ne, %2, %c0_i32_1 : i32
    %c0_i32_2 = arith.constant 0 : i32
    %4 = arith.cmpi slt, %2, %c0_i32_2 : i32
    %c0_i32_3 = arith.constant 0 : i32
    %5 = arith.cmpi slt, %1, %c0_i32_3 : i32
    %6 = arith.xori %4, %5 : i1
    %7 = arith.andi %6, %3 : i1
    %8 = arith.addi %2, %1 : i32
    %9 = arith.select %7, %8, %2 : i32
    %c0_i32_4 = arith.constant 0 : i32
    return %9, %arg1 : i32, i32
  }
  func.func @transform_4(%arg0: i32, %arg1: i32, %arg2: i32) -> (i32, i32) {
    %c0_i32 = arith.constant 0 : i32
    return %arg0, %arg1 : i32, i32
  }
}

module attributes {stable_mosaic.version = 11 : i64} {
  func.func @_ln_matmul_kernel(%arg0: i32, %arg1: i32, %arg2: memref<32x32xbf16, #tpu.memory_space<vmem>>, %arg3: memref<1x32xf32, #tpu.memory_space<vmem>>, %arg4: memref<1x32xf32, #tpu.memory_space<vmem>>, %arg5: memref<32x96xbf16, #tpu.memory_space<vmem>>, %arg6: memref<1x96xf32, #tpu.memory_space<vmem>>, %arg7: memref<32x96xbf16, #tpu.memory_space<vmem>>, %arg8: memref<32x32xbf16, #tpu.memory_space<vmem>>) attributes {dimension_semantics = [#tpu.dimension_semantics<parallel>, #tpu.dimension_semantics<arbitrary>], iteration_bounds = array<i64: 1, 1>, scalar_prefetch = 0 : i64, scratch_operands = 1 : i64, tpu.core_type = #tpu.core_type<tc>, window_params = [{transform_indices = @transform_0, window_bounds = array<i64: 32, 32>}, {pipeline_mode = #tpu.pipeline_mode<synchronous>, transform_indices = @transform_1, window_bounds = array<i64: 1, 32>}, {pipeline_mode = #tpu.pipeline_mode<synchronous>, transform_indices = @transform_2, window_bounds = array<i64: 1, 32>}, {transform_indices = @transform_3, window_bounds = array<i64: 32, 96>}, {transform_indices = @transform_4, window_bounds = array<i64: 1, 96>}, {transform_indices = @transform_5, window_bounds = array<i64: 32, 96>}]} {
    %c0_i32 = arith.constant 0 : i32
    %0 = arith.cmpi eq, %arg1, %c0_i32 : i32
    %1 = arith.extui %0 : i1 to i32
    %c0_i32_0 = arith.constant 0 : i32
    %2 = arith.cmpi ne, %1, %c0_i32_0 : i32
    scf.if %2 {
      %c0_8 = arith.constant 0 : index
      %c0_9 = arith.constant 0 : index
      %11 = vector.load %arg2[%c0_8, %c0_9] : memref<32x32xbf16, #tpu.memory_space<vmem>>, vector<32x32xbf16>
      %12 = arith.extf %11 : vector<32x32xbf16> to vector<32x32xf32>
      %cst_10 = arith.constant dense<0.000000e+00> : vector<32xf32>
      %13 = vector.multi_reduction <add>, %12, %cst_10 [1] : vector<32x32xf32> to vector<32xf32>
      %14 = vector.shape_cast %13 : vector<32xf32> to vector<32x1xf32>
      %cst_11 = arith.constant 3.200000e+01 : f32
      %15 = vector.broadcast %cst_11 : f32 to vector<32x1xf32>
      %16 = arith.divf %14, %15 : vector<32x1xf32>
      %17 = vector.broadcast %16 : vector<32x1xf32> to vector<32x32xf32>
      %18 = arith.subf %12, %17 : vector<32x32xf32>
      %19 = arith.mulf %18, %18 : vector<32x32xf32>
      %cst_12 = arith.constant dense<0.000000e+00> : vector<32xf32>
      %20 = vector.multi_reduction <add>, %19, %cst_12 [1] : vector<32x32xf32> to vector<32xf32>
      %21 = vector.shape_cast %20 : vector<32xf32> to vector<32x1xf32>
      %cst_13 = arith.constant 3.200000e+01 : f32
      %22 = vector.broadcast %cst_13 : f32 to vector<32x1xf32>
      %23 = arith.divf %21, %22 : vector<32x1xf32>
      %cst_14 = arith.constant 9.99999997E-7 : f32
      %24 = vector.broadcast %cst_14 : f32 to vector<32x1xf32>
      %25 = arith.addf %23, %24 : vector<32x1xf32>
      %26 = math.rsqrt %25 : vector<32x1xf32>
      %27 = vector.broadcast %26 : vector<32x1xf32> to vector<32x32xf32>
      %28 = arith.mulf %18, %27 : vector<32x32xf32>
      %c0_15 = arith.constant 0 : index
      %c0_16 = arith.constant 0 : index
      %29 = vector.load %arg3[%c0_15, %c0_16] : memref<1x32xf32, #tpu.memory_space<vmem>>, vector<1x32xf32>
      %30 = vector.broadcast %29 : vector<1x32xf32> to vector<32x32xf32>
      %31 = arith.mulf %28, %30 : vector<32x32xf32>
      %c0_17 = arith.constant 0 : index
      %c0_18 = arith.constant 0 : index
      %32 = vector.load %arg4[%c0_17, %c0_18] : memref<1x32xf32, #tpu.memory_space<vmem>>, vector<1x32xf32>
      %33 = vector.broadcast %32 : vector<1x32xf32> to vector<32x32xf32>
      %34 = arith.addf %31, %33 : vector<32x32xf32>
      %35 = arith.truncf %34 : vector<32x32xf32> to vector<32x32xbf16>
      %c0_19 = arith.constant 0 : index
      %c0_20 = arith.constant 0 : index
      %36 = vector.load %arg8[%c0_19, %c0_20] : memref<32x32xbf16, #tpu.memory_space<vmem>>, vector<32x32xbf16>
      tpu.vector_store %arg8[%c0_19, %c0_20], %35 {strides = array<i32>} : memref<32x32xbf16, #tpu.memory_space<vmem>>, vector<32x32xbf16>,
    } else {
    }
    %c0 = arith.constant 0 : index
    %c0_1 = arith.constant 0 : index
    %3 = vector.load %arg8[%c0, %c0_1] : memref<32x32xbf16, #tpu.memory_space<vmem>>, vector<32x32xbf16>
    %c0_2 = arith.constant 0 : index
    %c0_3 = arith.constant 0 : index
    %4 = vector.load %arg5[%c0_2, %c0_3] : memref<32x96xbf16, #tpu.memory_space<vmem>>, vector<32x96xbf16>
    %cst = arith.constant dense<0.000000e+00> : vector<32x96xf32>
    %5 = tpu.matmul %3, %4, %cst {dimension_numbers = #tpu.dot_dimension_numbers<[1], [0], [0], [1], [0, 0, 1, 1], [], []>} : vector<32x32xbf16>, vector<32x96xbf16>, vector<32x96xf32> -> vector<32x96xf32>
    %c0_4 = arith.constant 0 : index
    %c0_5 = arith.constant 0 : index
    %6 = vector.load %arg6[%c0_4, %c0_5] : memref<1x96xf32, #tpu.memory_space<vmem>>, vector<1x96xf32>
    %7 = vector.broadcast %6 : vector<1x96xf32> to vector<32x96xf32>
    %8 = arith.addf %5, %7 : vector<32x96xf32>
    %9 = arith.truncf %8 : vector<32x96xf32> to vector<32x96xbf16>
    %c0_6 = arith.constant 0 : index
    %c0_7 = arith.constant 0 : index
    %10 = vector.load %arg7[%c0_6, %c0_7] : memref<32x96xbf16, #tpu.memory_space<vmem>>, vector<32x96xbf16>
    tpu.vector_store %arg7[%c0_6, %c0_7], %9 {strides = array<i32>} : memref<32x96xbf16, #tpu.memory_space<vmem>>, vector<32x96xbf16>,
    return
  }
  func.func @transform_0(%arg0: i32, %arg1: i32) -> (i32, i32) {
    %c0_i32 = arith.constant 0 : i32
    %c0_i32_0 = arith.constant 0 : i32
    return %arg0, %c0_i32 : i32, i32
  }
  func.func @transform_1(%arg0: i32, %arg1: i32) -> (i32, i32) {
    %c0_i32 = arith.constant 0 : i32
    %c0_i32_0 = arith.constant 0 : i32
    %c0_i32_1 = arith.constant 0 : i32
    return %c0_i32, %c0_i32_0 : i32, i32
  }
  func.func @transform_2(%arg0: i32, %arg1: i32) -> (i32, i32) {
    %c0_i32 = arith.constant 0 : i32
    %c0_i32_0 = arith.constant 0 : i32
    %c0_i32_1 = arith.constant 0 : i32
    return %c0_i32, %c0_i32_0 : i32, i32
  }
  func.func @transform_3(%arg0: i32, %arg1: i32) -> (i32, i32) {
    %c0_i32 = arith.constant 0 : i32
    %c0_i32_0 = arith.constant 0 : i32
    return %c0_i32, %arg1 : i32, i32
  }
  func.func @transform_4(%arg0: i32, %arg1: i32) -> (i32, i32) {
    %c0_i32 = arith.constant 0 : i32
    %c0_i32_0 = arith.constant 0 : i32
    return %c0_i32, %arg1 : i32, i32
  }
  func.func @transform_5(%arg0: i32, %arg1: i32) -> (i32, i32) {
    %c0_i32 = arith.constant 0 : i32
    return %arg0, %arg1 : i32, i32
  }
}

module attributes {stable_mosaic.version = 11 : i64} {
  func.func @_attn_kernel(%arg0: i32, %arg1: i32, %arg2: i32, %arg3: memref<16x96xbf16, #tpu.memory_space<vmem>>, %arg4: memref<16x96xbf16, #tpu.memory_space<vmem>>, %arg5: memref<16x96xbf16, #tpu.memory_space<vmem>>, %arg6: memref<16x32xbf16, #tpu.memory_space<vmem>>) attributes {dimension_semantics = [#tpu.dimension_semantics<parallel>, #tpu.dimension_semantics<parallel>, #tpu.dimension_semantics<parallel>], iteration_bounds = array<i64: 2, 1, 1>, scalar_prefetch = 0 : i64, scratch_operands = 0 : i64, tpu.core_type = #tpu.core_type<tc>, window_params = [{transform_indices = @transform_0, window_bounds = array<i64: 16, 96>}, {transform_indices = @transform_1, window_bounds = array<i64: 16, 96>}, {transform_indices = @transform_2, window_bounds = array<i64: 16, 96>}, {transform_indices = @transform_3, window_bounds = array<i64: 16, 32>}]} {
    %0 = tpu.iota {dimensions = array<i32: 1>} : vector<16x16xi32>
    %c10_i32 = arith.constant 10 : i32
    %1 = vector.broadcast %c10_i32 : i32 to vector<16x16xi32>
    %2 = arith.cmpi slt, %0, %1 : vector<16x16xi32>
    %c0 = arith.constant 0 : index
    %c0_0 = arith.constant 0 : index
    %3 = vector.load %arg3[%c0, %c0_0] : memref<16x96xbf16, #tpu.memory_space<vmem>>, vector<16x8xbf16>
    %4 = arith.extf %3 : vector<16x8xbf16> to vector<16x8xf32>
    %cst = arith.constant 0.353553385 : f32
    %5 = vector.broadcast %cst : f32 to vector<16x8xf32>
    %6 = arith.mulf %4, %5 : vector<16x8xf32>
    %7 = arith.truncf %6 : vector<16x8xf32> to vector<16x8xbf16>
    %c0_1 = arith.constant 0 : index
    %c32 = arith.constant 32 : index
    %8 = vector.load %arg4[%c0_1, %c32] : memref<16x96xbf16, #tpu.memory_space<vmem>>, vector<16x8xbf16>
    %c0_2 = arith.constant 0 : index
    %c64 = arith.constant 64 : index
    %9 = vector.load %arg5[%c0_2, %c64] : memref<16x96xbf16, #tpu.memory_space<vmem>>, vector<16x8xbf16>
    %cst_3 = arith.constant dense<0.000000e+00> : vector<16x16xf32>
    %10 = tpu.matmul %7, %8, %cst_3 {dimension_numbers = #tpu.dot_dimension_numbers<[1], [1], [0], [0], [0, 0, 1, 0], [], []>} : vector<16x8xbf16>, vector<16x8xbf16>, vector<16x16xf32> -> vector<16x16xf32>
    %cst_4 = arith.constant -1.000000e+30 : f32
    %11 = vector.broadcast %cst_4 : f32 to vector<16x16xf32>
    %12 = arith.select %2, %10, %11 : vector<16x16xi1>, vector<16x16xf32>
    %cst_5 = arith.constant dense<0xFF800000> : vector<16xf32>
    %13 = vector.multi_reduction <maximumf>, %12, %cst_5 [1] : vector<16x16xf32> to vector<16xf32>
    %14 = vector.shape_cast %13 : vector<16xf32> to vector<16x1xf32>
    %15 = vector.broadcast %14 : vector<16x1xf32> to vector<16x16xf32>
    %16 = arith.subf %12, %15 : vector<16x16xf32>
    %17 = math.exp %16 : vector<16x16xf32>
    %cst_6 = arith.constant dense<0.000000e+00> : vector<16xf32>
    %18 = vector.multi_reduction <add>, %17, %cst_6 [1] : vector<16x16xf32> to vector<16xf32>
    %19 = vector.shape_cast %18 : vector<16xf32> to vector<16x1xf32>
    %20 = arith.truncf %17 : vector<16x16xf32> to vector<16x16xbf16>
    %cst_7 = arith.constant dense<0.000000e+00> : vector<16x8xf32>
    %21 = tpu.matmul %20, %9, %cst_7 {dimension_numbers = #tpu.dot_dimension_numbers<[1], [0], [0], [1], [0, 0, 1, 1], [], []>} : vector<16x16xbf16>, vector<16x8xbf16>, vector<16x8xf32> -> vector<16x8xf32>
    %cst_8 = arith.constant 1.000000e+00 : f32
    %22 = vector.broadcast %cst_8 : f32 to vector<16x1xf32>
    %23 = arith.divf %22, %19 : vector<16x1xf32>
    %24 = vector.broadcast %23 : vector<16x1xf32> to vector<16x8xf32>
    %25 = arith.mulf %21, %24 : vector<16x8xf32>
    %c0_9 = arith.constant 0 : index
    %c8 = arith.constant 8 : index
    %26 = vector.load %arg3[%c0_9, %c8] : memref<16x96xbf16, #tpu.memory_space<vmem>>, vector<16x8xbf16>
    %27 = arith.extf %26 : vector<16x8xbf16> to vector<16x8xf32>
    %cst_10 = arith.constant 0.353553385 : f32
    %28 = vector.broadcast %cst_10 : f32 to vector<16x8xf32>
    %29 = arith.mulf %27, %28 : vector<16x8xf32>
    %30 = arith.truncf %29 : vector<16x8xf32> to vector<16x8xbf16>
    %c0_11 = arith.constant 0 : index
    %c40 = arith.constant 40 : index
    %31 = vector.load %arg4[%c0_11, %c40] : memref<16x96xbf16, #tpu.memory_space<vmem>>, vector<16x8xbf16>
    %c0_12 = arith.constant 0 : index
    %c72 = arith.constant 72 : index
    %32 = vector.load %arg5[%c0_12, %c72] : memref<16x96xbf16, #tpu.memory_space<vmem>>, vector<16x8xbf16>
    %cst_13 = arith.constant dense<0.000000e+00> : vector<16x16xf32>
    %33 = tpu.matmul %30, %31, %cst_13 {dimension_numbers = #tpu.dot_dimension_numbers<[1], [1], [0], [0], [0, 0, 1, 0], [], []>} : vector<16x8xbf16>, vector<16x8xbf16>, vector<16x16xf32> -> vector<16x16xf32>
    %cst_14 = arith.constant -1.000000e+30 : f32
    %34 = vector.broadcast %cst_14 : f32 to vector<16x16xf32>
    %35 = arith.select %2, %33, %34 : vector<16x16xi1>, vector<16x16xf32>
    %cst_15 = arith.constant dense<0xFF800000> : vector<16xf32>
    %36 = vector.multi_reduction <maximumf>, %35, %cst_15 [1] : vector<16x16xf32> to vector<16xf32>
    %37 = vector.shape_cast %36 : vector<16xf32> to vector<16x1xf32>
    %38 = vector.broadcast %37 : vector<16x1xf32> to vector<16x16xf32>
    %39 = arith.subf %35, %38 : vector<16x16xf32>
    %40 = math.exp %39 : vector<16x16xf32>
    %cst_16 = arith.constant dense<0.000000e+00> : vector<16xf32>
    %41 = vector.multi_reduction <add>, %40, %cst_16 [1] : vector<16x16xf32> to vector<16xf32>
    %42 = vector.shape_cast %41 : vector<16xf32> to vector<16x1xf32>
    %43 = arith.truncf %40 : vector<16x16xf32> to vector<16x16xbf16>
    %cst_17 = arith.constant dense<0.000000e+00> : vector<16x8xf32>
    %44 = tpu.matmul %43, %32, %cst_17 {dimension_numbers = #tpu.dot_dimension_numbers<[1], [0], [0], [1], [0, 0, 1, 1], [], []>} : vector<16x16xbf16>, vector<16x8xbf16>, vector<16x8xf32> -> vector<16x8xf32>
    %cst_18 = arith.constant 1.000000e+00 : f32
    %45 = vector.broadcast %cst_18 : f32 to vector<16x1xf32>
    %46 = arith.divf %45, %42 : vector<16x1xf32>
    %47 = vector.broadcast %46 : vector<16x1xf32> to vector<16x8xf32>
    %48 = arith.mulf %44, %47 : vector<16x8xf32>
    %c0_19 = arith.constant 0 : index
    %c16 = arith.constant 16 : index
    %49 = vector.load %arg3[%c0_19, %c16] : memref<16x96xbf16, #tpu.memory_space<vmem>>, vector<16x8xbf16>
    %50 = arith.extf %49 : vector<16x8xbf16> to vector<16x8xf32>
    %cst_20 = arith.constant 0.353553385 : f32
    %51 = vector.broadcast %cst_20 : f32 to vector<16x8xf32>
    %52 = arith.mulf %50, %51 : vector<16x8xf32>
    %53 = arith.truncf %52 : vector<16x8xf32> to vector<16x8xbf16>
    %c0_21 = arith.constant 0 : index
    %c48 = arith.constant 48 : index
    %54 = vector.load %arg4[%c0_21, %c48] : memref<16x96xbf16, #tpu.memory_space<vmem>>, vector<16x8xbf16>
    %c0_22 = arith.constant 0 : index
    %c80 = arith.constant 80 : index
    %55 = vector.load %arg5[%c0_22, %c80] : memref<16x96xbf16, #tpu.memory_space<vmem>>, vector<16x8xbf16>
    %cst_23 = arith.constant dense<0.000000e+00> : vector<16x16xf32>
    %56 = tpu.matmul %53, %54, %cst_23 {dimension_numbers = #tpu.dot_dimension_numbers<[1], [1], [0], [0], [0, 0, 1, 0], [], []>} : vector<16x8xbf16>, vector<16x8xbf16>, vector<16x16xf32> -> vector<16x16xf32>
    %cst_24 = arith.constant -1.000000e+30 : f32
    %57 = vector.broadcast %cst_24 : f32 to vector<16x16xf32>
    %58 = arith.select %2, %56, %57 : vector<16x16xi1>, vector<16x16xf32>
    %cst_25 = arith.constant dense<0xFF800000> : vector<16xf32>
    %59 = vector.multi_reduction <maximumf>, %58, %cst_25 [1] : vector<16x16xf32> to vector<16xf32>
    %60 = vector.shape_cast %59 : vector<16xf32> to vector<16x1xf32>
    %61 = vector.broadcast %60 : vector<16x1xf32> to vector<16x16xf32>
    %62 = arith.subf %58, %61 : vector<16x16xf32>
    %63 = math.exp %62 : vector<16x16xf32>
    %cst_26 = arith.constant dense<0.000000e+00> : vector<16xf32>
    %64 = vector.multi_reduction <add>, %63, %cst_26 [1] : vector<16x16xf32> to vector<16xf32>
    %65 = vector.shape_cast %64 : vector<16xf32> to vector<16x1xf32>
    %66 = arith.truncf %63 : vector<16x16xf32> to vector<16x16xbf16>
    %cst_27 = arith.constant dense<0.000000e+00> : vector<16x8xf32>
    %67 = tpu.matmul %66, %55, %cst_27 {dimension_numbers = #tpu.dot_dimension_numbers<[1], [0], [0], [1], [0, 0, 1, 1], [], []>} : vector<16x16xbf16>, vector<16x8xbf16>, vector<16x8xf32> -> vector<16x8xf32>
    %cst_28 = arith.constant 1.000000e+00 : f32
    %68 = vector.broadcast %cst_28 : f32 to vector<16x1xf32>
    %69 = arith.divf %68, %65 : vector<16x1xf32>
    %70 = vector.broadcast %69 : vector<16x1xf32> to vector<16x8xf32>
    %71 = arith.mulf %67, %70 : vector<16x8xf32>
    %c0_29 = arith.constant 0 : index
    %c24 = arith.constant 24 : index
    %72 = vector.load %arg3[%c0_29, %c24] : memref<16x96xbf16, #tpu.memory_space<vmem>>, vector<16x8xbf16>
    %73 = arith.extf %72 : vector<16x8xbf16> to vector<16x8xf32>
    %cst_30 = arith.constant 0.353553385 : f32
    %74 = vector.broadcast %cst_30 : f32 to vector<16x8xf32>
    %75 = arith.mulf %73, %74 : vector<16x8xf32>
    %76 = arith.truncf %75 : vector<16x8xf32> to vector<16x8xbf16>
    %c0_31 = arith.constant 0 : index
    %c56 = arith.constant 56 : index
    %77 = vector.load %arg4[%c0_31, %c56] : memref<16x96xbf16, #tpu.memory_space<vmem>>, vector<16x8xbf16>
    %c0_32 = arith.constant 0 : index
    %c88 = arith.constant 88 : index
    %78 = vector.load %arg5[%c0_32, %c88] : memref<16x96xbf16, #tpu.memory_space<vmem>>, vector<16x8xbf16>
    %cst_33 = arith.constant dense<0.000000e+00> : vector<16x16xf32>
    %79 = tpu.matmul %76, %77, %cst_33 {dimension_numbers = #tpu.dot_dimension_numbers<[1], [1], [0], [0], [0, 0, 1, 0], [], []>} : vector<16x8xbf16>, vector<16x8xbf16>, vector<16x16xf32> -> vector<16x16xf32>
    %cst_34 = arith.constant -1.000000e+30 : f32
    %80 = vector.broadcast %cst_34 : f32 to vector<16x16xf32>
    %81 = arith.select %2, %79, %80 : vector<16x16xi1>, vector<16x16xf32>
    %cst_35 = arith.constant dense<0xFF800000> : vector<16xf32>
    %82 = vector.multi_reduction <maximumf>, %81, %cst_35 [1] : vector<16x16xf32> to vector<16xf32>
    %83 = vector.shape_cast %82 : vector<16xf32> to vector<16x1xf32>
    %84 = vector.broadcast %83 : vector<16x1xf32> to vector<16x16xf32>
    %85 = arith.subf %81, %84 : vector<16x16xf32>
    %86 = math.exp %85 : vector<16x16xf32>
    %cst_36 = arith.constant dense<0.000000e+00> : vector<16xf32>
    %87 = vector.multi_reduction <add>, %86, %cst_36 [1] : vector<16x16xf32> to vector<16xf32>
    %88 = vector.shape_cast %87 : vector<16xf32> to vector<16x1xf32>
    %89 = arith.truncf %86 : vector<16x16xf32> to vector<16x16xbf16>
    %cst_37 = arith.constant dense<0.000000e+00> : vector<16x8xf32>
    %90 = tpu.matmul %89, %78, %cst_37 {dimension_numbers = #tpu.dot_dimension_numbers<[1], [0], [0], [1], [0, 0, 1, 1], [], []>} : vector<16x16xbf16>, vector<16x8xbf16>, vector<16x8xf32> -> vector<16x8xf32>
    %cst_38 = arith.constant 1.000000e+00 : f32
    %91 = vector.broadcast %cst_38 : f32 to vector<16x1xf32>
    %92 = arith.divf %91, %88 : vector<16x1xf32>
    %93 = vector.broadcast %92 : vector<16x1xf32> to vector<16x8xf32>
    %94 = arith.mulf %90, %93 : vector<16x8xf32>
    %95 = tpu.concatenate %25, %48, %71, %94 in 1 : vector<16x8xf32>, vector<16x8xf32>, vector<16x8xf32>, vector<16x8xf32> -> vector<16x32xf32>
    %96 = arith.truncf %95 : vector<16x32xf32> to vector<16x32xbf16>
    %c0_39 = arith.constant 0 : index
    %c0_40 = arith.constant 0 : index
    %97 = vector.load %arg6[%c0_39, %c0_40] : memref<16x32xbf16, #tpu.memory_space<vmem>>, vector<16x32xbf16>
    tpu.vector_store %arg6[%c0_39, %c0_40], %96 {strides = array<i32>} : memref<16x32xbf16, #tpu.memory_space<vmem>>, vector<16x32xbf16>,
    return
  }
  func.func @transform_0(%arg0: i32, %arg1: i32, %arg2: i32) -> (i32, i32) {
    %c1_i32 = arith.constant 1 : i32
    %0 = arith.muli %arg0, %c1_i32 : i32
    %1 = arith.addi %0, %arg2 : i32
    %c0_i32 = arith.constant 0 : i32
    %2 = arith.addi %c0_i32, %arg1 : i32
    %c0_i32_0 = arith.constant 0 : i32
    return %1, %2 : i32, i32
  }
  func.func @transform_1(%arg0: i32, %arg1: i32, %arg2: i32) -> (i32, i32) {
    %c0_i32 = arith.constant 0 : i32
    %0 = arith.addi %c0_i32, %arg1 : i32
    %c0_i32_0 = arith.constant 0 : i32
    return %arg0, %0 : i32, i32
  }
  func.func @transform_2(%arg0: i32, %arg1: i32, %arg2: i32) -> (i32, i32) {
    %c0_i32 = arith.constant 0 : i32
    %0 = arith.addi %c0_i32, %arg1 : i32
    %c0_i32_0 = arith.constant 0 : i32
    return %arg0, %0 : i32, i32
  }
  func.func @transform_3(%arg0: i32, %arg1: i32, %arg2: i32) -> (i32, i32) {
    %c1_i32 = arith.constant 1 : i32
    %0 = arith.muli %arg0, %c1_i32 : i32
    %1 = arith.addi %0, %arg2 : i32
    %c0_i32 = arith.constant 0 : i32
    return %1, %arg1 : i32, i32
  }
}

module attributes {stable_mosaic.version = 11 : i64} {
  func.func @_matmul_kernel(%arg0: i32, %arg1: i32, %arg2: i32, %arg3: memref<32x32xbf16, #tpu.memory_space<vmem>>, %arg4: memref<32x32xbf16, #tpu.memory_space<vmem>>, %arg5: memref<1x32xf32, #tpu.memory_space<vmem>>, %arg6: memref<32x32xbf16, #tpu.memory_space<vmem>>, %arg7: memref<32x32xbf16, #tpu.memory_space<vmem>>, %arg8: memref<32x32xf32, #tpu.memory_space<vmem>>) attributes {dimension_semantics = [#tpu.dimension_semantics<parallel>, #tpu.dimension_semantics<parallel>, #tpu.dimension_semantics<arbitrary>], iteration_bounds = array<i64: 1, 1, 1>, scalar_prefetch = 0 : i64, scratch_operands = 1 : i64, tpu.core_type = #tpu.core_type<tc>, window_params = [{transform_indices = @transform_0, window_bounds = array<i64: 32, 32>}, {transform_indices = @transform_1, window_bounds = array<i64: 32, 32>}, {transform_indices = @transform_2, window_bounds = array<i64: 1, 32>}, {transform_indices = @transform_3, window_bounds = array<i64: 32, 32>}, {transform_indices = @transform_4, window_bounds = array<i64: 32, 32>}]} {
    %c0_i32 = arith.constant 0 : i32
    %0 = arith.cmpi eq, %arg2, %c0_i32 : i32
    %1 = arith.extui %0 : i1 to i32
    %c0_i32_0 = arith.constant 0 : i32
    %2 = arith.cmpi ne, %1, %c0_i32_0 : i32
    scf.if %2 {
      %cst_10 = arith.constant 0.000000e+00 : f32
      %12 = vector.broadcast %cst_10 : f32 to vector<32x32xf32>
      %c0_11 = arith.constant 0 : index
      %c0_12 = arith.constant 0 : index
      %13 = vector.load %arg8[%c0_11, %c0_12] : memref<32x32xf32, #tpu.memory_space<vmem>>, vector<32x32xf32>
      tpu.vector_store %arg8[%c0_11, %c0_12], %12 {strides = array<i32>} : memref<32x32xf32, #tpu.memory_space<vmem>>, vector<32x32xf32>,
    } else {
    }
    %c0 = arith.constant 0 : index
    %c0_1 = arith.constant 0 : index
    %3 = vector.load %arg8[%c0, %c0_1] : memref<32x32xf32, #tpu.memory_space<vmem>>, vector<32x32xf32>
    %c0_2 = arith.constant 0 : index
    %c0_3 = arith.constant 0 : index
    %4 = vector.load %arg3[%c0_2, %c0_3] : memref<32x32xbf16, #tpu.memory_space<vmem>>, vector<32x32xbf16>
    %c0_4 = arith.constant 0 : index
    %c0_5 = arith.constant 0 : index
    %5 = vector.load %arg4[%c0_4, %c0_5] : memref<32x32xbf16, #tpu.memory_space<vmem>>, vector<32x32xbf16>
    %cst = arith.constant dense<0.000000e+00> : vector<32x32xf32>
    %6 = tpu.matmul %4, %5, %cst {dimension_numbers = #tpu.dot_dimension_numbers<[1], [0], [0], [1], [0, 0, 1, 1], [], []>} : vector<32x32xbf16>, vector<32x32xbf16>, vector<32x32xf32> -> vector<32x32xf32>
    %7 = arith.addf %3, %6 : vector<32x32xf32>
    %c0_6 = arith.constant 0 : index
    %c0_7 = arith.constant 0 : index
    %8 = vector.load %arg8[%c0_6, %c0_7] : memref<32x32xf32, #tpu.memory_space<vmem>>, vector<32x32xf32>
    tpu.vector_store %arg8[%c0_6, %c0_7], %7 {strides = array<i32>} : memref<32x32xf32, #tpu.memory_space<vmem>>, vector<32x32xf32>,
    %c0_i32_8 = arith.constant 0 : i32
    %9 = arith.cmpi eq, %arg2, %c0_i32_8 : i32
    %10 = arith.extui %9 : i1 to i32
    %c0_i32_9 = arith.constant 0 : i32
    %11 = arith.cmpi ne, %10, %c0_i32_9 : i32
    scf.if %11 {
      %c0_10 = arith.constant 0 : index
      %c0_11 = arith.constant 0 : index
      %12 = vector.load %arg8[%c0_10, %c0_11] : memref<32x32xf32, #tpu.memory_space<vmem>>, vector<32x32xf32>
      %c0_12 = arith.constant 0 : index
      %c0_13 = arith.constant 0 : index
      %13 = vector.load %arg5[%c0_12, %c0_13] : memref<1x32xf32, #tpu.memory_space<vmem>>, vector<1x32xf32>
      %14 = vector.broadcast %13 : vector<1x32xf32> to vector<32x32xf32>
      %15 = arith.addf %12, %14 : vector<32x32xf32>
      %c0_14 = arith.constant 0 : index
      %c0_15 = arith.constant 0 : index
      %16 = vector.load %arg6[%c0_14, %c0_15] : memref<32x32xbf16, #tpu.memory_space<vmem>>, vector<32x32xbf16>
      %17 = arith.extf %16 : vector<32x32xbf16> to vector<32x32xf32>
      %18 = arith.addf %15, %17 : vector<32x32xf32>
      %19 = arith.truncf %18 : vector<32x32xf32> to vector<32x32xbf16>
      %c0_16 = arith.constant 0 : index
      %c0_17 = arith.constant 0 : index
      %20 = vector.load %arg7[%c0_16, %c0_17] : memref<32x32xbf16, #tpu.memory_space<vmem>>, vector<32x32xbf16>
      tpu.vector_store %arg7[%c0_16, %c0_17], %19 {strides = array<i32>} : memref<32x32xbf16, #tpu.memory_space<vmem>>, vector<32x32xbf16>,
    } else {
    }
    return
  }
  func.func @transform_0(%arg0: i32, %arg1: i32, %arg2: i32) -> (i32, i32) {
    %c0_i32 = arith.constant 0 : i32
    return %arg0, %arg2 : i32, i32
  }
  func.func @transform_1(%arg0: i32, %arg1: i32, %arg2: i32) -> (i32, i32) {
    %c0_i32 = arith.constant 0 : i32
    return %arg2, %arg1 : i32, i32
  }
  func.func @transform_2(%arg0: i32, %arg1: i32, %arg2: i32) -> (i32, i32) {
    %c0_i32 = arith.constant 0 : i32
    %c0_i32_0 = arith.constant 0 : i32
    return %c0_i32, %arg1 : i32, i32
  }
  func.func @transform_3(%arg0: i32, %arg1: i32, %arg2: i32) -> (i32, i32) {
    %c1_i32 = arith.constant 1 : i32
    %c0_i32 = arith.constant 0 : i32
    %0 = arith.cmpi eq, %c1_i32, %c0_i32 : i32
    %c1_i32_0 = arith.constant 1 : i32
    %1 = arith.select %0, %c1_i32_0, %c1_i32 : i32
    %2 = arith.remsi %arg0, %1 : i32
    %c0_i32_1 = arith.constant 0 : i32
    %3 = arith.cmpi ne, %2, %c0_i32_1 : i32
    %c0_i32_2 = arith.constant 0 : i32
    %4 = arith.cmpi slt, %2, %c0_i32_2 : i32
    %c0_i32_3 = arith.constant 0 : i32
    %5 = arith.cmpi slt, %1, %c0_i32_3 : i32
    %6 = arith.xori %4, %5 : i1
    %7 = arith.andi %6, %3 : i1
    %8 = arith.addi %2, %1 : i32
    %9 = arith.select %7, %8, %2 : i32
    %c0_i32_4 = arith.constant 0 : i32
    return %9, %arg1 : i32, i32
  }
  func.func @transform_4(%arg0: i32, %arg1: i32, %arg2: i32) -> (i32, i32) {
    %c0_i32 = arith.constant 0 : i32
    return %arg0, %arg1 : i32, i32
  }
}

module attributes {stable_mosaic.version = 11 : i64} {
  func.func @_mlp_kernel(%arg0: i32, %arg1: i32, %arg2: memref<32x32xbf16, #tpu.memory_space<vmem>>, %arg3: memref<1x32xf32, #tpu.memory_space<vmem>>, %arg4: memref<1x32xf32, #tpu.memory_space<vmem>>, %arg5: memref<32x128xbf16, #tpu.memory_space<vmem>>, %arg6: memref<1x128xf32, #tpu.memory_space<vmem>>, %arg7: memref<128x32xbf16, #tpu.memory_space<vmem>>, %arg8: memref<1x32xf32, #tpu.memory_space<vmem>>, %arg9: memref<32x32xbf16, #tpu.memory_space<vmem>>, %arg10: memref<32x32xbf16, #tpu.memory_space<vmem>>, %arg11: memref<32x32xbf16, #tpu.memory_space<vmem>>, %arg12: memref<32x32xf32, #tpu.memory_space<vmem>>) attributes {dimension_semantics = [#tpu.dimension_semantics<parallel>, #tpu.dimension_semantics<arbitrary>], iteration_bounds = array<i64: 1, 1>, scalar_prefetch = 0 : i64, scratch_operands = 2 : i64, tpu.core_type = #tpu.core_type<tc>, window_params = [{transform_indices = @transform_0, window_bounds = array<i64: 32, 32>}, {pipeline_mode = #tpu.pipeline_mode<synchronous>, transform_indices = @transform_1, window_bounds = array<i64: 1, 32>}, {pipeline_mode = #tpu.pipeline_mode<synchronous>, transform_indices = @transform_2, window_bounds = array<i64: 1, 32>}, {transform_indices = @transform_3, window_bounds = array<i64: 32, 128>}, {transform_indices = @transform_4, window_bounds = array<i64: 1, 128>}, {transform_indices = @transform_5, window_bounds = array<i64: 128, 32>}, {pipeline_mode = #tpu.pipeline_mode<synchronous>, transform_indices = @transform_6, window_bounds = array<i64: 1, 32>}, {transform_indices = @transform_7, window_bounds = array<i64: 32, 32>}, {transform_indices = @transform_8, window_bounds = array<i64: 32, 32>}]} {
    %c0_i32 = arith.constant 0 : i32
    %0 = arith.cmpi eq, %arg1, %c0_i32 : i32
    %1 = arith.extui %0 : i1 to i32
    %c0_i32_0 = arith.constant 0 : i32
    %2 = arith.cmpi ne, %1, %c0_i32_0 : i32
    scf.if %2 {
      %c0_19 = arith.constant 0 : index
      %c0_20 = arith.constant 0 : index
      %31 = vector.load %arg2[%c0_19, %c0_20] : memref<32x32xbf16, #tpu.memory_space<vmem>>, vector<32x32xbf16>
      %32 = arith.extf %31 : vector<32x32xbf16> to vector<32x32xf32>
      %cst_21 = arith.constant dense<0.000000e+00> : vector<32xf32>
      %33 = vector.multi_reduction <add>, %32, %cst_21 [1] : vector<32x32xf32> to vector<32xf32>
      %34 = vector.shape_cast %33 : vector<32xf32> to vector<32x1xf32>
      %cst_22 = arith.constant 3.200000e+01 : f32
      %35 = vector.broadcast %cst_22 : f32 to vector<32x1xf32>
      %36 = arith.divf %34, %35 : vector<32x1xf32>
      %37 = vector.broadcast %36 : vector<32x1xf32> to vector<32x32xf32>
      %38 = arith.subf %32, %37 : vector<32x32xf32>
      %39 = arith.mulf %38, %38 : vector<32x32xf32>
      %cst_23 = arith.constant dense<0.000000e+00> : vector<32xf32>
      %40 = vector.multi_reduction <add>, %39, %cst_23 [1] : vector<32x32xf32> to vector<32xf32>
      %41 = vector.shape_cast %40 : vector<32xf32> to vector<32x1xf32>
      %cst_24 = arith.constant 3.200000e+01 : f32
      %42 = vector.broadcast %cst_24 : f32 to vector<32x1xf32>
      %43 = arith.divf %41, %42 : vector<32x1xf32>
      %cst_25 = arith.constant 9.99999997E-7 : f32
      %44 = vector.broadcast %cst_25 : f32 to vector<32x1xf32>
      %45 = arith.addf %43, %44 : vector<32x1xf32>
      %46 = math.rsqrt %45 : vector<32x1xf32>
      %47 = vector.broadcast %46 : vector<32x1xf32> to vector<32x32xf32>
      %48 = arith.mulf %38, %47 : vector<32x32xf32>
      %c0_26 = arith.constant 0 : index
      %c0_27 = arith.constant 0 : index
      %49 = vector.load %arg3[%c0_26, %c0_27] : memref<1x32xf32, #tpu.memory_space<vmem>>, vector<1x32xf32>
      %50 = vector.broadcast %49 : vector<1x32xf32> to vector<32x32xf32>
      %51 = arith.mulf %48, %50 : vector<32x32xf32>
      %c0_28 = arith.constant 0 : index
      %c0_29 = arith.constant 0 : index
      %52 = vector.load %arg4[%c0_28, %c0_29] : memref<1x32xf32, #tpu.memory_space<vmem>>, vector<1x32xf32>
      %53 = vector.broadcast %52 : vector<1x32xf32> to vector<32x32xf32>
      %54 = arith.addf %51, %53 : vector<32x32xf32>
      %55 = arith.truncf %54 : vector<32x32xf32> to vector<32x32xbf16>
      %c0_30 = arith.constant 0 : index
      %c0_31 = arith.constant 0 : index
      %56 = vector.load %arg11[%c0_30, %c0_31] : memref<32x32xbf16, #tpu.memory_space<vmem>>, vector<32x32xbf16>
      tpu.vector_store %arg11[%c0_30, %c0_31], %55 {strides = array<i32>} : memref<32x32xbf16, #tpu.memory_space<vmem>>, vector<32x32xbf16>,
      %cst_32 = arith.constant 0.000000e+00 : f32
      %57 = vector.broadcast %cst_32 : f32 to vector<32x32xf32>
      %c0_33 = arith.constant 0 : index
      %c0_34 = arith.constant 0 : index
      %58 = vector.load %arg12[%c0_33, %c0_34] : memref<32x32xf32, #tpu.memory_space<vmem>>, vector<32x32xf32>
      tpu.vector_store %arg12[%c0_33, %c0_34], %57 {strides = array<i32>} : memref<32x32xf32, #tpu.memory_space<vmem>>, vector<32x32xf32>,
    } else {
    }
    %c0 = arith.constant 0 : index
    %c0_1 = arith.constant 0 : index
    %3 = vector.load %arg11[%c0, %c0_1] : memref<32x32xbf16, #tpu.memory_space<vmem>>, vector<32x32xbf16>
    %c0_2 = arith.constant 0 : index
    %c0_3 = arith.constant 0 : index
    %4 = vector.load %arg5[%c0_2, %c0_3] : memref<32x128xbf16, #tpu.memory_space<vmem>>, vector<32x128xbf16>
    %cst = arith.constant dense<0.000000e+00> : vector<32x128xf32>
    %5 = tpu.matmul %3, %4, %cst {dimension_numbers = #tpu.dot_dimension_numbers<[1], [0], [0], [1], [0, 0, 1, 1], [], []>} : vector<32x32xbf16>, vector<32x128xbf16>, vector<32x128xf32> -> vector<32x128xf32>
    %c0_4 = arith.constant 0 : index
    %c0_5 = arith.constant 0 : index
    %6 = vector.load %arg6[%c0_4, %c0_5] : memref<1x128xf32, #tpu.memory_space<vmem>>, vector<1x128xf32>
    %7 = vector.broadcast %6 : vector<1x128xf32> to vector<32x128xf32>
    %8 = arith.addf %5, %7 : vector<32x128xf32>
    %9 = arith.mulf %8, %8 : vector<32x128xf32>
    %10 = arith.mulf %8, %9 : vector<32x128xf32>
    %cst_6 = arith.constant 4.471500e-02 : f32
    %11 = vector.broadcast %cst_6 : f32 to vector<32x128xf32>
    %12 = arith.mulf %11, %10 : vector<32x128xf32>
    %13 = arith.addf %8, %12 : vector<32x128xf32>
    %cst_7 = arith.constant 0.797884583 : f32
    %14 = vector.broadcast %cst_7 : f32 to vector<32x128xf32>
    %15 = arith.mulf %14, %13 : vector<32x128xf32>
    %16 = math.tanh %15 : vector<32x128xf32>
    %cst_8 = arith.constant 1.000000e+00 : f32
    %17 = vector.broadcast %cst_8 : f32 to vector<32x128xf32>
    %18 = arith.addf %17, %16 : vector<32x128xf32>
    %cst_9 = arith.constant 5.000000e-01 : f32
    %19 = vector.broadcast %cst_9 : f32 to vector<32x128xf32>
    %20 = arith.mulf %19, %18 : vector<32x128xf32>
    %21 = arith.mulf %8, %20 : vector<32x128xf32>
    %c0_10 = arith.constant 0 : index
    %c0_11 = arith.constant 0 : index
    %22 = vector.load %arg12[%c0_10, %c0_11] : memref<32x32xf32, #tpu.memory_space<vmem>>, vector<32x32xf32>
    %23 = arith.truncf %21 : vector<32x128xf32> to vector<32x128xbf16>
    %c0_12 = arith.constant 0 : index
    %c0_13 = arith.constant 0 : index
    %24 = vector.load %arg7[%c0_12, %c0_13] : memref<128x32xbf16, #tpu.memory_space<vmem>>, vector<128x32xbf16>
    %cst_14 = arith.constant dense<0.000000e+00> : vector<32x32xf32>
    %25 = tpu.matmul %23, %24, %cst_14 {dimension_numbers = #tpu.dot_dimension_numbers<[1], [0], [0], [1], [0, 0, 1, 1], [], []>} : vector<32x128xbf16>, vector<128x32xbf16>, vector<32x32xf32> -> vector<32x32xf32>
    %26 = arith.addf %22, %25 : vector<32x32xf32>
    %c0_15 = arith.constant 0 : index
    %c0_16 = arith.constant 0 : index
    %27 = vector.load %arg12[%c0_15, %c0_16] : memref<32x32xf32, #tpu.memory_space<vmem>>, vector<32x32xf32>
    tpu.vector_store %arg12[%c0_15, %c0_16], %26 {strides = array<i32>} : memref<32x32xf32, #tpu.memory_space<vmem>>, vector<32x32xf32>,
    %c0_i32_17 = arith.constant 0 : i32
    %28 = arith.cmpi eq, %arg1, %c0_i32_17 : i32
    %29 = arith.extui %28 : i1 to i32
    %c0_i32_18 = arith.constant 0 : i32
    %30 = arith.cmpi ne, %29, %c0_i32_18 : i32
    scf.if %30 {
      %c0_19 = arith.constant 0 : index
      %c0_20 = arith.constant 0 : index
      %31 = vector.load %arg12[%c0_19, %c0_20] : memref<32x32xf32, #tpu.memory_space<vmem>>, vector<32x32xf32>
      %c0_21 = arith.constant 0 : index
      %c0_22 = arith.constant 0 : index
      %32 = vector.load %arg8[%c0_21, %c0_22] : memref<1x32xf32, #tpu.memory_space<vmem>>, vector<1x32xf32>
      %33 = vector.broadcast %32 : vector<1x32xf32> to vector<32x32xf32>
      %34 = arith.addf %31, %33 : vector<32x32xf32>
      %c0_23 = arith.constant 0 : index
      %c0_24 = arith.constant 0 : index
      %35 = vector.load %arg9[%c0_23, %c0_24] : memref<32x32xbf16, #tpu.memory_space<vmem>>, vector<32x32xbf16>
      %36 = arith.extf %35 : vector<32x32xbf16> to vector<32x32xf32>
      %37 = arith.addf %34, %36 : vector<32x32xf32>
      %38 = arith.truncf %37 : vector<32x32xf32> to vector<32x32xbf16>
      %c0_25 = arith.constant 0 : index
      %c0_26 = arith.constant 0 : index
      %39 = vector.load %arg10[%c0_25, %c0_26] : memref<32x32xbf16, #tpu.memory_space<vmem>>, vector<32x32xbf16>
      tpu.vector_store %arg10[%c0_25, %c0_26], %38 {strides = array<i32>} : memref<32x32xbf16, #tpu.memory_space<vmem>>, vector<32x32xbf16>,
    } else {
    }
    return
  }
  func.func @transform_0(%arg0: i32, %arg1: i32) -> (i32, i32) {
    %c0_i32 = arith.constant 0 : i32
    %c0_i32_0 = arith.constant 0 : i32
    return %arg0, %c0_i32 : i32, i32
  }
  func.func @transform_1(%arg0: i32, %arg1: i32) -> (i32, i32) {
    %c0_i32 = arith.constant 0 : i32
    %c0_i32_0 = arith.constant 0 : i32
    %c0_i32_1 = arith.constant 0 : i32
    return %c0_i32, %c0_i32_0 : i32, i32
  }
  func.func @transform_2(%arg0: i32, %arg1: i32) -> (i32, i32) {
    %c0_i32 = arith.constant 0 : i32
    %c0_i32_0 = arith.constant 0 : i32
    %c0_i32_1 = arith.constant 0 : i32
    return %c0_i32, %c0_i32_0 : i32, i32
  }
  func.func @transform_3(%arg0: i32, %arg1: i32) -> (i32, i32) {
    %c0_i32 = arith.constant 0 : i32
    %c0_i32_0 = arith.constant 0 : i32
    return %c0_i32, %arg1 : i32, i32
  }
  func.func @transform_4(%arg0: i32, %arg1: i32) -> (i32, i32) {
    %c0_i32 = arith.constant 0 : i32
    %c0_i32_0 = arith.constant 0 : i32
    return %c0_i32, %arg1 : i32, i32
  }
  func.func @transform_5(%arg0: i32, %arg1: i32) -> (i32, i32) {
    %c0_i32 = arith.constant 0 : i32
    %c0_i32_0 = arith.constant 0 : i32
    return %arg1, %c0_i32 : i32, i32
  }
  func.func @transform_6(%arg0: i32, %arg1: i32) -> (i32, i32) {
    %c0_i32 = arith.constant 0 : i32
    %c0_i32_0 = arith.constant 0 : i32
    %c0_i32_1 = arith.constant 0 : i32
    return %c0_i32, %c0_i32_0 : i32, i32
  }
  func.func @transform_7(%arg0: i32, %arg1: i32) -> (i32, i32) {
    %c0_i32 = arith.constant 0 : i32
    %c0_i32_0 = arith.constant 0 : i32
    return %arg0, %c0_i32 : i32, i32
  }
  func.func @transform_8(%arg0: i32, %arg1: i32) -> (i32, i32) {
    %c0_i32 = arith.constant 0 : i32
    %c0_i32_0 = arith.constant 0 : i32
    return %arg0, %c0_i32 : i32, i32
  }
}

module attributes {stable_mosaic.version = 11 : i64} {
  func.func @_layernorm_kernel(%arg0: i32, %arg1: memref<4x32xbf16, #tpu.memory_space<vmem>>, %arg2: memref<1x32xf32, #tpu.memory_space<vmem>>, %arg3: memref<1x32xf32, #tpu.memory_space<vmem>>, %arg4: memref<4x32xf32, #tpu.memory_space<vmem>>) attributes {dimension_semantics = [#tpu.dimension_semantics<parallel>], iteration_bounds = array<i64: 1>, scalar_prefetch = 0 : i64, scratch_operands = 0 : i64, tpu.core_type = #tpu.core_type<tc>, window_params = [{transform_indices = @transform_0, window_bounds = array<i64: 4, 32>}, {pipeline_mode = #tpu.pipeline_mode<synchronous>, transform_indices = @transform_1, window_bounds = array<i64: 1, 32>}, {pipeline_mode = #tpu.pipeline_mode<synchronous>, transform_indices = @transform_2, window_bounds = array<i64: 1, 32>}, {transform_indices = @transform_3, window_bounds = array<i64: 4, 32>}]} {
    %c0 = arith.constant 0 : index
    %c0_0 = arith.constant 0 : index
    %0 = vector.load %arg1[%c0, %c0_0] : memref<4x32xbf16, #tpu.memory_space<vmem>>, vector<4x32xbf16>
    %1 = arith.extf %0 : vector<4x32xbf16> to vector<4x32xf32>
    %cst = arith.constant dense<0.000000e+00> : vector<4xf32>
    %2 = vector.multi_reduction <add>, %1, %cst [1] : vector<4x32xf32> to vector<4xf32>
    %3 = vector.shape_cast %2 : vector<4xf32> to vector<4x1xf32>
    %cst_1 = arith.constant 3.200000e+01 : f32
    %4 = vector.broadcast %cst_1 : f32 to vector<4x1xf32>
    %5 = arith.divf %3, %4 : vector<4x1xf32>
    %6 = vector.broadcast %5 : vector<4x1xf32> to vector<4x32xf32>
    %7 = arith.subf %1, %6 : vector<4x32xf32>
    %8 = arith.mulf %7, %7 : vector<4x32xf32>
    %cst_2 = arith.constant dense<0.000000e+00> : vector<4xf32>
    %9 = vector.multi_reduction <add>, %8, %cst_2 [1] : vector<4x32xf32> to vector<4xf32>
    %10 = vector.shape_cast %9 : vector<4xf32> to vector<4x1xf32>
    %cst_3 = arith.constant 3.200000e+01 : f32
    %11 = vector.broadcast %cst_3 : f32 to vector<4x1xf32>
    %12 = arith.divf %10, %11 : vector<4x1xf32>
    %cst_4 = arith.constant 9.99999997E-7 : f32
    %13 = vector.broadcast %cst_4 : f32 to vector<4x1xf32>
    %14 = arith.addf %12, %13 : vector<4x1xf32>
    %15 = math.rsqrt %14 : vector<4x1xf32>
    %16 = vector.broadcast %15 : vector<4x1xf32> to vector<4x32xf32>
    %17 = arith.mulf %7, %16 : vector<4x32xf32>
    %c0_5 = arith.constant 0 : index
    %c0_6 = arith.constant 0 : index
    %18 = vector.load %arg2[%c0_5, %c0_6] : memref<1x32xf32, #tpu.memory_space<vmem>>, vector<1x32xf32>
    %19 = vector.broadcast %18 : vector<1x32xf32> to vector<4x32xf32>
    %20 = arith.mulf %17, %19 : vector<4x32xf32>
    %c0_7 = arith.constant 0 : index
    %c0_8 = arith.constant 0 : index
    %21 = vector.load %arg3[%c0_7, %c0_8] : memref<1x32xf32, #tpu.memory_space<vmem>>, vector<1x32xf32>
    %22 = vector.broadcast %21 : vector<1x32xf32> to vector<4x32xf32>
    %23 = arith.addf %20, %22 : vector<4x32xf32>
    %c0_9 = arith.constant 0 : index
    %c0_10 = arith.constant 0 : index
    %24 = vector.load %arg4[%c0_9, %c0_10] : memref<4x32xf32, #tpu.memory_space<vmem>>, vector<4x32xf32>
    tpu.vector_store %arg4[%c0_9, %c0_10], %23 {strides = array<i32>} : memref<4x32xf32, #tpu.memory_space<vmem>>, vector<4x32xf32>,
    return
  }
  func.func @transform_0(%arg0: i32) -> (i32, i32) {
    %c0_i32 = arith.constant 0 : i32
    %c0_i32_0 = arith.constant 0 : i32
    return %arg0, %c0_i32 : i32, i32
  }
  func.func @transform_1(%arg0: i32) -> (i32, i32) {
    %c0_i32 = arith.constant 0 : i32
    %c0_i32_0 = arith.constant 0 : i32
    %c0_i32_1 = arith.constant 0 : i32
    return %c0_i32, %c0_i32_0 : i32, i32
  }
  func.func @transform_2(%arg0: i32) -> (i32, i32) {
    %c0_i32 = arith.constant 0 : i32
    %c0_i32_0 = arith.constant 0 : i32
    %c0_i32_1 = arith.constant 0 : i32
    return %c0_i32, %c0_i32_0 : i32, i32
  }
  func.func @transform_3(%arg0: i32) -> (i32, i32) {
    %c0_i32 = arith.constant 0 : i32
    %c0_i32_0 = arith.constant 0 : i32
    return %arg0, %c0_i32 : i32, i32
  }
}

module attributes {stable_mosaic.version = 11 : i64} {
  func.func @_matmul_kernel(%arg0: i32, %arg1: i32, %arg2: i32, %arg3: memref<2x32xbf16, #tpu.memory_space<vmem>>, %arg4: memref<32x10xbf16, #tpu.memory_space<vmem>>, %arg5: memref<1x10xf32, #tpu.memory_space<vmem>>, %arg6: memref<2x10xf32, #tpu.memory_space<vmem>>, %arg7: memref<2x10xf32, #tpu.memory_space<vmem>>) attributes {dimension_semantics = [#tpu.dimension_semantics<parallel>, #tpu.dimension_semantics<parallel>, #tpu.dimension_semantics<arbitrary>], iteration_bounds = array<i64: 1, 1, 1>, scalar_prefetch = 0 : i64, scratch_operands = 1 : i64, tpu.core_type = #tpu.core_type<tc>, window_params = [{transform_indices = @transform_0, window_bounds = array<i64: 2, 32>}, {transform_indices = @transform_1, window_bounds = array<i64: 32, 10>}, {transform_indices = @transform_2, window_bounds = array<i64: 1, 10>}, {transform_indices = @transform_3, window_bounds = array<i64: 2, 10>}]} {
    %c0_i32 = arith.constant 0 : i32
    %0 = arith.cmpi eq, %arg2, %c0_i32 : i32
    %1 = arith.extui %0 : i1 to i32
    %c0_i32_0 = arith.constant 0 : i32
    %2 = arith.cmpi ne, %1, %c0_i32_0 : i32
    scf.if %2 {
      %cst_10 = arith.constant 0.000000e+00 : f32
      %12 = vector.broadcast %cst_10 : f32 to vector<2x10xf32>
      %c0_11 = arith.constant 0 : index
      %c0_12 = arith.constant 0 : index
      %13 = vector.load %arg7[%c0_11, %c0_12] : memref<2x10xf32, #tpu.memory_space<vmem>>, vector<2x10xf32>
      tpu.vector_store %arg7[%c0_11, %c0_12], %12 {strides = array<i32>} : memref<2x10xf32, #tpu.memory_space<vmem>>, vector<2x10xf32>,
    } else {
    }
    %c0 = arith.constant 0 : index
    %c0_1 = arith.constant 0 : index
    %3 = vector.load %arg7[%c0, %c0_1] : memref<2x10xf32, #tpu.memory_space<vmem>>, vector<2x10xf32>
    %c0_2 = arith.constant 0 : index
    %c0_3 = arith.constant 0 : index
    %4 = vector.load %arg3[%c0_2, %c0_3] : memref<2x32xbf16, #tpu.memory_space<vmem>>, vector<2x32xbf16>
    %c0_4 = arith.constant 0 : index
    %c0_5 = arith.constant 0 : index
    %5 = vector.load %arg4[%c0_4, %c0_5] : memref<32x10xbf16, #tpu.memory_space<vmem>>, vector<32x10xbf16>
    %cst = arith.constant dense<0.000000e+00> : vector<2x10xf32>
    %6 = tpu.matmul %4, %5, %cst {dimension_numbers = #tpu.dot_dimension_numbers<[1], [0], [0], [1], [0, 0, 1, 1], [], []>} : vector<2x32xbf16>, vector<32x10xbf16>, vector<2x10xf32> -> vector<2x10xf32>
    %7 = arith.addf %3, %6 : vector<2x10xf32>
    %c0_6 = arith.constant 0 : index
    %c0_7 = arith.constant 0 : index
    %8 = vector.load %arg7[%c0_6, %c0_7] : memref<2x10xf32, #tpu.memory_space<vmem>>, vector<2x10xf32>
    tpu.vector_store %arg7[%c0_6, %c0_7], %7 {strides = array<i32>} : memref<2x10xf32, #tpu.memory_space<vmem>>, vector<2x10xf32>,
    %c0_i32_8 = arith.constant 0 : i32
    %9 = arith.cmpi eq, %arg2, %c0_i32_8 : i32
    %10 = arith.extui %9 : i1 to i32
    %c0_i32_9 = arith.constant 0 : i32
    %11 = arith.cmpi ne, %10, %c0_i32_9 : i32
    scf.if %11 {
      %c0_10 = arith.constant 0 : index
      %c0_11 = arith.constant 0 : index
      %12 = vector.load %arg7[%c0_10, %c0_11] : memref<2x10xf32, #tpu.memory_space<vmem>>, vector<2x10xf32>
      %c0_12 = arith.constant 0 : index
      %c0_13 = arith.constant 0 : index
      %13 = vector.load %arg5[%c0_12, %c0_13] : memref<1x10xf32, #tpu.memory_space<vmem>>, vector<1x10xf32>
      %14 = vector.broadcast %13 : vector<1x10xf32> to vector<2x10xf32>
      %15 = arith.addf %12, %14 : vector<2x10xf32>
      %c0_14 = arith.constant 0 : index
      %c0_15 = arith.constant 0 : index
      %16 = vector.load %arg6[%c0_14, %c0_15] : memref<2x10xf32, #tpu.memory_space<vmem>>, vector<2x10xf32>
      tpu.vector_store %arg6[%c0_14, %c0_15], %15 {strides = array<i32>} : memref<2x10xf32, #tpu.memory_space<vmem>>, vector<2x10xf32>,
    } else {
    }
    return
  }
  func.func @transform_0(%arg0: i32, %arg1: i32, %arg2: i32) -> (i32, i32) {
    %c0_i32 = arith.constant 0 : i32
    return %arg0, %arg2 : i32, i32
  }
  func.func @transform_1(%arg0: i32, %arg1: i32, %arg2: i32) -> (i32, i32) {
    %c0_i32 = arith.constant 0 : i32
    return %arg2, %arg1 : i32, i32
  }
  func.func @transform_2(%arg0: i32, %arg1: i32, %arg2: i32) -> (i32, i32) {
    %c0_i32 = arith.constant 0 : i32
    %c0_i32_0 = arith.constant 0 : i32
    return %c0_i32, %arg1 : i32, i32
  }
  func.func @transform_3(%arg0: i32, %arg1: i32, %arg2: i32) -> (i32, i32) {
    %c0_i32 = arith.constant 0 : i32
    return %arg0, %arg1 : i32, i32
  }
}

</mosaic_0001>

<bundles_post_ra>
// kernel: _lambda_.12
= control target key start
LH: loop header
LB: loop body
LE: loop exit
PB: predicated region body
PF: predicated region fallthrough
CT: control target
= control target key end

     0   :  { %vm33_vm0 = vcmask 261120   ;;  %v274_v10 = vmov 32.0   ;;  %vm149_vm10 = vcmask 257024   ;;  %vm218_vm15 = vcmask 781312   ;;  %s372_s0 = inlined_call_operand.vmem [shape: bf16[32,32], index: 0, kind: input, shape index: {}]   ;;  %s373_s1 = inlined_call_operand.vmem [shape: f32[1,32], index: 1, kind: input, shape index: {}]   ;;  %s374_s2 = inlined_call_operand.vmem [shape: f32[1,32], index: 2, kind: input, shape index: {}]   ;;  %s375_s4 = inlined_call_operand.vmem [shape: f32[1,96], index: 4, kind: input, shape index: {}]   ;;  %s376_s3 = inlined_call_operand.vmem [shape: bf16[32,96], index: 3, kind: input, shape index: {}]   ;;  %s377_s5 = inlined_call_operand.vmem [shape: bf16[32,96], index: 5, kind: output, shape index: {}]  }
   0x1   :  { %v257_v0 = vld [vmem:[%s372_s0 + $0x8] sm:$0xff]   ;;  %v250_v1 = vld [vmem:[%s372_s0] sm:$0xff]   ;;  %264 = vrcp.f32 %v274_v10 }
   0x2   :  { %v255_v2 = vunpack.c.l.bf16 %v257_v0  ;;  %v251_v3 = vunpack.c.l.bf16 %v250_v1  ;;  %v256_v6 = vunpack.c.h.bf16 %v257_v0  ;;  %v252_v7 = vunpack.c.h.bf16 %v250_v1  ;;  %v248_v45 = vld [vmem:[%s376_s3 + $0x8] sm:$0xff]  ;;  %v247_v48 = vld [vmem:[%s376_s3] sm:$0xff] }
   0x3   :  { %201 = vmatpush.bf16.msra.mxu0 %v248_v45  ;;  %258 = vmatpush.bf16.msra.mxu1 %v248_v45  ;;  %v261_v1 = vld [vmem:[%s373_s1] ss:$0 sm:$0xff] }
   0x4   :  { %v40_v4 = vsel %vm33_vm0, %v255_v2, 0.0  ;;  %v34_v5 = vsel %vm33_vm0, %v251_v3, 0.0  ;;  %v43_v8 = vsel %vm33_vm0, %v256_v6, 0.0  ;;  %v37_v9 = vsel %vm33_vm0, %v252_v7, 0.0 }
   0x5   :  { %41 = vadd.xlane.f32.xlu1 %v40_v4  ;;  %35 = vadd.xlane.f32.xlu0 %v34_v5 }
   0x7   :  { %v265_v11 = vpop.eup %264  ;;  %202 = vmatpush.bf16.msra.mxu0 %v247_v48  ;;  %259 = vmatpush.bf16.msra.mxu1 %v247_v48 }
   0x8   :  { %v47_v12 = vmul.f32 32.0, %v265_v11  ;;  %vm51_vm1 = vweird.f32 %v265_v11 }
   0xa   :  { %v48_v13 = vsub.f32 1.0, %v47_v12 }
   0xc   :  { %v49_v14 = vmul.f32 %v265_v11, %v48_v13 }
   0xd   :  { %44 = vadd.xlane.f32.xlu1 %v43_v8  ;;  %38 = vadd.xlane.f32.xlu0 %v37_v9 }
   0xe   :  { %v50_v15 = vadd.f32 %v265_v11, %v49_v14 }
  0x10   :  { %v52_v16 = vsel %vm51_vm1, %v265_v11, %v50_v15 }
  0x78   :  { %v42_v17 = vpop.xlane.xlu1 %41  ;;  %v36_v18 = vpop.xlane.xlu0 %35 }
  0x79   :  { %v55_v19 = vmul.f32 %v52_v16, %v42_v17  ;;  %v53_v20 = vmul.f32 %v52_v16, %v36_v18 }
  0x7b   :  { %v315_v21 = vsub.f32 %v255_v2, %v55_v19  ;;  %v317_v22 = vsub.f32 %v251_v3, %v53_v20 }
  0x7d   :  { %v63_v23 = vmul.f32 %v315_v21, %v315_v21  ;;  %v61_v24 = vmul.f32 %v317_v22, %v317_v22 }
  0x7f   :  { %v71_v25 = vsel %vm33_vm0, %v63_v23, 0.0  ;;  %v65_v26 = vsel %vm33_vm0, %v61_v24, 0.0 }
  0x80   :  { %v45_v27 = vpop.xlane.xlu1 %44  ;;  %72 = vadd.xlane.f32.xlu0 %v71_v25  ;;  %66 = vadd.xlane.f32.xlu2 %v65_v26  ;;  %v39_v28 = vpop.xlane.xlu0 %38 }
  0x81   :  { %v56_v29 = vmul.f32 %v52_v16, %v45_v27  ;;  %v54_v30 = vmul.f32 %v52_v16, %v39_v28 }
  0x83   :  { %v325_v31 = vsub.f32 %v256_v6, %v56_v29  ;;  %v327_v32 = vsub.f32 %v252_v7, %v54_v30  ;;  %v262_v6 = vld [vmem:[%s374_s2] ss:$0 sm:$0xff] }
  0x85   :  { %v64_v33 = vmul.f32 %v325_v31, %v325_v31  ;;  %v62_v34 = vmul.f32 %v327_v32, %v327_v32 }
  0x87   :  { %v74_v35 = vsel %vm33_vm0, %v64_v33, 0.0  ;;  %v68_v36 = vsel %vm33_vm0, %v62_v34, 0.0 }
  0x88   :  { %75 = vadd.xlane.f32.xlu1 %v74_v35  ;;  %69 = vadd.xlane.f32.xlu2 %v68_v36 }
  0xf3   :  { %v67_v37 = vpop.xlane.xlu2 %66  ;;  %v73_v38 = vpop.xlane.xlu0 %72 }
  0xf4   :  { %v77_v39 = vmul.f32 %v67_v37, %v52_v16  ;;  %v79_v40 = vmul.f32 %v73_v38, %v52_v16 }
  0xf6   :  { %v81_v41 = vadd.f32 1e-06, %v77_v39  ;;  %v83_v42 = vadd.f32 1e-06, %v79_v40 }
  0xf8   :  { %266 = vrsqrt.f32 %v81_v41  ;;  %vm91_vm4 = vweird.f32 %v81_v41  ;;  %vm111_vm6 = vweird.f32 %v83_v42 }
  0xf9   :  { %268 = vrsqrt.f32 %v83_v42 }
  0xfb   :  { %v76_v43 = vpop.xlane.xlu1 %75  ;;  %v70_v44 = vpop.xlane.xlu2 %69 }
  0xfc   :  { %v80_v46 = vmul.f32 %v76_v43, %v52_v16  ;;  %v78_v47 = vmul.f32 %v70_v44, %v52_v16 }
  0xfe   :  { %v267_v49 = vpop.eup %266  ;;  %v84_v50 = vadd.f32 1e-06, %v80_v46  ;;  %v82_v51 = vadd.f32 1e-06, %v78_v47 }
  0xff   :  { %v269_v52 = vpop.eup %268  ;;  %v86_v53 = vmul.f32 %v267_v49, %v81_v41  ;;  %vm92_vm2 = vweird.f32 %v267_v49 }
 0x100   :  { %v106_v54 = vmul.f32 %v269_v52, %v83_v42  ;;  %270 = vrsqrt.f32 %v84_v50  ;;  %vm112_vm3 = vweird.f32 %v269_v52  ;;  %vm93_vm5 = vmor %vm91_vm4, %vm92_vm2  ;;  %vm121_vm11 = vweird.f32 %v84_v50 }
 0x101   :  { %v87_v55 = vmul.f32 %v267_v49, %v86_v53  ;;  %272 = vrsqrt.f32 %v82_v51  ;;  %vm113_vm7 = vmor %vm111_vm6, %vm112_vm3  ;;  %vm101_vm13 = vweird.f32 %v82_v51 }
 0x102   :  { %v107_v56 = vmul.f32 %v269_v52, %v106_v54 }
 0x103   :  { %v88_v57 = vmul.f32 0.5, %v87_v55 }
 0x104   :  { %v108_v58 = vmul.f32 0.5, %v107_v56 }
 0x105   :  { %v89_v59 = vsub.f32 1.5, %v88_v57 }
 0x106   :  { %v271_v60 = vpop.eup %270  ;;  %v109_v61 = vsub.f32 1.5, %v108_v58 }
 0x107   :  { %v273_v62 = vpop.eup %272  ;;  %v90_v63 = vmul.f32 %v267_v49, %v89_v59  ;;  %v116_v0 = vmul.f32 %v271_v60, %v84_v50  ;;  %vm122_vm8 = vweird.f32 %v271_v60 }
 0x108   :  { %v110_v2 = vmul.f32 %v269_v52, %v109_v61  ;;  %v96_v3 = vmul.f32 %v273_v62, %v82_v51  ;;  %vm102_vm9 = vweird.f32 %v273_v62  ;;  %vm123_vm12 = vmor %vm121_vm11, %vm122_vm8 }
 0x109   :  { %v94_v4 = vsel %vm93_vm5, %v267_v49, %v90_v63  ;;  %v117_v5 = vmul.f32 %v271_v60, %v116_v0  ;;  %vm103_vm14 = vmor %vm101_vm13, %vm102_vm9 }
 0x10a   :  { %v125_v7 = vmul.f32 %v94_v4, %v317_v22  ;;  %v114_v8 = vsel %vm113_vm7, %v269_v52, %v110_v2  ;;  %v97_v9 = vmul.f32 %v273_v62, %v96_v3 }
 0x10b   :  { %v127_v10 = vmul.f32 %v114_v8, %v315_v21  ;;  %v118_v11 = vmul.f32 0.5, %v117_v5 }
 0x10c   :  { %v133_v12 = vmul.f32 %v261_v1, %v125_v7  ;;  %v98_v13 = vmul.f32 0.5, %v97_v9 }
 0x10d   :  { %v135_v14 = vmul.f32 %v261_v1, %v127_v10  ;;  %v119_v15 = vsub.f32 1.5, %v118_v11 }
 0x10e   :  { %v141_v16 = vadd.f32 %v262_v6, %v133_v12  ;;  %v99_v17 = vsub.f32 1.5, %v98_v13 }
 0x10f   :  { %v143_v18 = vadd.f32 %v262_v6, %v135_v14  ;;  %v120_v19 = vmul.f32 %v271_v60, %v119_v15 }
 0x110   :  { %v145_v20 = vpack.c.bf16 %v141_v16, %v141_v16  ;;  %v100_v22 = vmul.f32 %v273_v62, %v99_v17 }
 0x111   :  { %v147_v23 = vpack.c.bf16 %v143_v18, %v143_v18  ;;  %v124_v24 = vsel %vm123_vm12, %v271_v60, %v120_v19 }
 0x112   :  { %150 = vst.msk [vmem:[#allocation2] sm:$0xf] %vm149_vm10, %v145_v20  ;;  %v128_v21 = vmul.f32 %v124_v24, %v325_v31  ;;  %v104_v25 = vsel %vm103_vm14, %v273_v62, %v100_v22  ;;  %v263_v31 = vld [vmem:[%s375_s4] ss:$0 sm:$0xff] }
 0x113   :  { %152 = vst.msk [vmem:[#allocation2 + $0x8] sm:$0xf] %vm149_vm10, %v147_v23  ;;  %v126_v26 = vmul.f32 %v104_v25, %v327_v32 }
 0x114   :  { %v136_v27 = vmul.f32 %v261_v1, %v128_v21 }
 0x115   :  { %v134_v28 = vmul.f32 %v261_v1, %v126_v26 }
 0x116   :  { %v144_v29 = vadd.f32 %v262_v6, %v136_v27 }
 0x117   :  { %v142_v30 = vadd.f32 %v262_v6, %v134_v28 }
 0x118   :  { %v148_v33 = vpack.c.bf16 %v144_v29, %v144_v29 }
 0x119   :  { %v146_v34 = vpack.c.bf16 %v142_v30, %v142_v30 }
 0x11a   :  { %153 = vst.msk [vmem:[#allocation2 + $0xc] sm:$0xf] %vm149_vm10, %v148_v33 }
 0x11b   :  { %151 = vst.msk [vmem:[#allocation2 + $0x4] sm:$0xf] %vm149_vm10, %v146_v34 }
 0x121   :  { %v246_v35 = vld [vmem:[#allocation2 + $0x8] sm:$0xff] }
 0x122   :  { %v245_v36 = vld [vmem:[#allocation2] sm:$0xff]  ;;  %244 = vmatmul.msk.bf16.vlgmr.msra.gmra.mxu1 %vm33_vm0, %v246_v35 }
 0x123   :  { %243 = vmatmul.msk.bf16.vlgmr.msra.gmra.mxu0 %vm33_vm0, %v245_v36 }
 0x19f   :  { %v209_v32 = vpop.f32.mrf.mxu1 }
 0x1a0   :  { %v204_v37 = vpop.f32.mrf.mxu0  ;;  %v210_v38 = vadd.f32 %v263_v31, %v209_v32 }
 0x1a1   :  { %v205_v39 = vadd.f32 %v263_v31, %v204_v37 }
 0x1a2   :  { %v216_v40 = vpack.c.bf16 %v210_v38, %v210_v38 }
 0x1a3   :  { %v214_v41 = vpack.c.bf16 %v205_v39, %v205_v39 }
 0x1a4   :  { %221 = vst.msk [vmem:[%s377_s5 + $0x8] sm:$0xf] %vm218_vm15, %v216_v40 }
 0x1a5   :  { %219 = vst.msk [vmem:[%s377_s5] sm:$0xf] %vm218_vm15, %v214_v41 }
 0x1a7   :  { %v211_v42 = vpop.f32.mrf.mxu1 }
 0x1a8   :  { %v206_v43 = vpop.f32.mrf.mxu0  ;;  %v212_v44 = vadd.f32 %v263_v31, %v211_v42 }
 0x1a9   :  { %v207_v45 = vadd.f32 %v263_v31, %v206_v43 }
 0x1aa   :  { %v217_v46 = vpack.c.bf16 %v212_v44, %v212_v44 }
 0x1ab   :  { %v215_v47 = vpack.c.bf16 %v207_v45, %v207_v45 }
 0x1ac   :  { %222 = vst.msk [vmem:[%s377_s5 + $0xc] sm:$0xf] %vm218_vm15, %v217_v46 }
 0x1ad   :  { %220 = vst.msk [vmem:[%s377_s5 + $0x4] sm:$0xf] %vm218_vm15, %v215_v47 }

// kernel: _lambda_.11
= control target key start
LH: loop header
LB: loop body
LE: loop exit
PB: predicated region body
PF: predicated region fallthrough
CT: control target
= control target key end

     0   :  { %s1269_s15 = smov 0   ;;  %s1271_s16 = smov 0   ;;  %s1467_s0 = inlined_call_operand.vmem [shape: bf16[16,768], index: 0, kind: input, shape index: {}]   ;;  %s1468_s1 = inlined_call_operand.vmem [shape: bf16[768,32], index: 1, kind: input, shape index: {}]   ;;  %s1469_s2 = inlined_call_operand.vmem [shape: f32[1,32], index: 2, kind: input, shape index: {}]   ;;  %s1470_s3 = inlined_call_operand.vmem [shape: bf16[8,32], index: 3, kind: input, shape index: {}]   ;;  %s1471_s4 = inlined_call_operand.vmem [shape: bf16[16,32], index: 4, kind: output, shape index: {}]  }
   0x1   :  { %s1273_s17 = smov 0  }
   0x2 LB: > { %s33_s18 = sadd.s32 1, %s1237_s16  ;;  %p947_p0 = scmp.ge.s32.totalorder %s1241_s17, 1  ;;  %s1241_s17 = sphi %s1273_s17, %s14_s17   ;;  %s1237_s16 = sphi %s1271_s16, %s1473_s16   ;;  %s1233_s15 = sphi %s1269_s15, %s1472_s15  }
   0x3   : > { %p35_p1 = scmp.ge.s32.totalorder %s33_s18, 2  ;;  %p223_p2 = scmp.lt.s32.totalorder %s1241_s17, 3 }
   0x5   : > { %s1475_s18 = smov (%p35_p1, %s33_s18), 0  ;;  %p224_p3 = pnand %p947_p0, %p223_p2 }
   0x6   : > { %p271_p4 = scmp.lt.s32.totalorder (!%p224_p3), %s1233_s15, 1 }
   0x7   : > { %227 = sbr.rel (%p224_p3) target bundleno = 223 (0xdf), region = 36 }
   0xc   : > { %v1151_v0 = vld [vmem:[%s1468_s1 + $0x38] sm:$0xff]  ;;  %v1150_v2 = vld [vmem:[%s1468_s1 + $0x30] sm:$0xff]  ;;  %v1149_v8 = vld [vmem:[%s1468_s1 + $0x28] sm:$0xff]  ;;  %s1477_s15 = smov (!%p271_p4, %s1233_s15), 1  ;;  %vm307_vm0 = vcmask 261120   ;;  %v1243_v63 = vmov 0.0  }
   0xd   : > { %v1159_v1 = vld [vmem:[%s1468_s1 + $0x78] sm:$0xff]  ;;  %718 = vmatpush.bf16.msra.mxu0 %v1151_v0  ;;  %v1158_v3 = vld [vmem:[%s1468_s1 + $0x70] sm:$0xff]  ;;  %v1157_v9 = vld [vmem:[%s1468_s1 + $0x68] sm:$0xff]  ;;  %s1192_s7 = smul.u32 24, %s1477_s15  ;;  %308 = vst.msk [vmem:[#allocation2] sm:$0xff] %vm307_vm0, %v1243_v63  ;;  %s949_s10 = sshll.u32 %s1477_s15, 2 }
   0xe   : > { %731 = vmatpush.bf16.msra.mxu1 %v1159_v1  ;;  %v1167_v4 = vld [vmem:[%s1468_s1 + $0xb8] sm:$0xff]  ;;  %v1166_v6 = vld [vmem:[%s1468_s1 + $0xb0] sm:$0xff]  ;;  %v1165_v10 = vld [vmem:[%s1468_s1 + $0xa8] sm:$0xff]  ;;  %s302_s13 = scalar_lea.vmem %s1471_s4, %s949_s10  ;;  %vm812_vm1 = vcmask 257024  }
   0xf   : > { %v1175_v5 = vld [vmem:[%s1468_s1 + $0xf8] sm:$0xff]  ;;  %744 = vmatpush.bf16.msra.mxu2 %v1167_v4  ;;  %v1174_v7 = vld [vmem:[%s1468_s1 + $0xf0] sm:$0xff]  ;;  %v1173_v11 = vld [vmem:[%s1468_s1 + $0xe8] sm:$0xff]  ;;  %s1363_s22 = scalar_lea.vmem %s1467_s0, %s1192_s7 }
  0x10   : > { %757 = vmatpush.bf16.msra.mxu3 %v1175_v5  ;;  %v1148_v12 = vld [vmem:[%s1468_s1 + $0x20] sm:$0xff]  ;;  %v1147_v16 = vld [vmem:[%s1468_s1 + $0x18] sm:$0xff]  ;;  %v1146_v20 = vld [vmem:[%s1468_s1 + $0x10] sm:$0xff] }
  0x11   : > { %719 = vmatpush.bf16.msra.mxu0 %v1150_v2  ;;  %v1156_v13 = vld [vmem:[%s1468_s1 + $0x60] sm:$0xff]  ;;  %v1155_v17 = vld [vmem:[%s1468_s1 + $0x58] sm:$0xff]  ;;  %v1154_v21 = vld [vmem:[%s1468_s1 + $0x50] sm:$0xff] }
  0x12   : > { %732 = vmatpush.bf16.msra.mxu1 %v1158_v3  ;;  %v1164_v14 = vld [vmem:[%s1468_s1 + $0xa0] sm:$0xff]  ;;  %v1163_v18 = vld [vmem:[%s1468_s1 + $0x98] sm:$0xff]  ;;  %v1162_v22 = vld [vmem:[%s1468_s1 + $0x90] sm:$0xff] }
  0x13   : > { %745 = vmatpush.bf16.msra.mxu2 %v1166_v6  ;;  %v1172_v15 = vld [vmem:[%s1468_s1 + $0xe0] sm:$0xff]  ;;  %v1171_v19 = vld [vmem:[%s1468_s1 + $0xd8] sm:$0xff]  ;;  %v1170_v23 = vld [vmem:[%s1468_s1 + $0xd0] sm:$0xff] }
  0x14   : > { %758 = vmatpush.bf16.msra.mxu3 %v1174_v7  ;;  %v1145_v24 = vld [vmem:[%s1468_s1 + $0x8] sm:$0xff]  ;;  %v310_v26 = vld [vmem:[%s1363_s22] sm:$0xff]  ;;  %v1183_v34 = vld [vmem:[%s1468_s1 + $0x138] sm:$0xff] }
  0x15   : > { %720 = vmatpush.bf16.msra.mxu0 %v1149_v8  ;;  %v1153_v25 = vld [vmem:[%s1468_s1 + $0x48] sm:$0xff]  ;;  %v412_v29 = vunpack.c.l.b16 %v310_v26  ;;  %v413_v30 = vunpack.c.h.b16 %v310_v26  ;;  %v1144_v32 = vld [vmem:[%s1468_s1] sm:$0xff]  ;;  %v1191_v35 = vld [vmem:[%s1468_s1 + $0x178] sm:$0xff] }
  0x16   : > { %733 = vmatpush.bf16.msra.mxu1 %v1157_v9  ;;  %v1161_v27 = vld [vmem:[%s1468_s1 + $0x88] sm:$0xff]  ;;  %v1152_v33 = vld [vmem:[%s1468_s1 + $0x40] sm:$0xff]  ;;  %v1182_v42 = vld [vmem:[%s1468_s1 + $0x130] sm:$0xff] }
  0x17   : > { %746 = vmatpush.bf16.msra.mxu2 %v1165_v10  ;;  %v1169_v28 = vld [vmem:[%s1468_s1 + $0xc8] sm:$0xff]  ;;  %v1160_v36 = vld [vmem:[%s1468_s1 + $0x80] sm:$0xff]  ;;  %v418_v40 = vpack.c.b16 %v412_v29, %v412_v29  ;;  %v419_v41 = vpack.c.b16 %v413_v30, %v413_v30  ;;  %v1190_v43 = vld [vmem:[%s1468_s1 + $0x170] sm:$0xff] }
  0x18   : > { %759 = vmatpush.bf16.msra.mxu3 %v1173_v11  ;;  %v311_v31 = vld [vmem:[%s1363_s22 + $0x8] sm:$0xff]  ;;  %v1168_v37 = vld [vmem:[%s1468_s1 + $0xc0] sm:$0xff]  ;;  %v1179_v50 = vld [vmem:[%s1468_s1 + $0x118] sm:$0xff] }
  0x19   : > { %721 = vmatpush.bf16.msra.mxu0 %v1148_v12  ;;  %v414_v38 = vunpack.c.l.b16 %v311_v31  ;;  %v415_v39 = vunpack.c.h.b16 %v311_v31  ;;  %v1181_v46 = vld [vmem:[%s1468_s1 + $0x128] sm:$0xff]  ;;  %v1180_v48 = vld [vmem:[%s1468_s1 + $0x120] sm:$0xff]  ;;  %v1187_v51 = vld [vmem:[%s1468_s1 + $0x158] sm:$0xff] }
  0x1a   : > { %734 = vmatpush.bf16.msra.mxu1 %v1156_v13  ;;  %v1189_v47 = vld [vmem:[%s1468_s1 + $0x168] sm:$0xff]  ;;  %v1188_v49 = vld [vmem:[%s1468_s1 + $0x160] sm:$0xff]  ;;  %v1178_v52 = vld [vmem:[%s1468_s1 + $0x110] sm:$0xff] }
  0x1b   : > { %747 = vmatpush.bf16.msra.mxu2 %v1164_v14  ;;  %v420_v44 = vpack.c.b16 %v414_v38, %v414_v38  ;;  %v421_v45 = vpack.c.b16 %v415_v39, %v415_v39  ;;  %v1186_v53 = vld [vmem:[%s1468_s1 + $0x150] sm:$0xff]  ;;  %v1177_v54 = vld [vmem:[%s1468_s1 + $0x108] sm:$0xff]  ;;  %v1176_v59 = vld [vmem:[%s1468_s1 + $0x100] sm:$0xff] }
  0x1c   : > { %760 = vmatpush.bf16.msra.mxu3 %v1172_v15  ;;  %v1185_v55 = vld [vmem:[%s1468_s1 + $0x148] sm:$0xff]  ;;  %v312_v56 = vld [vmem:[%s1363_s22 + $0x10] sm:$0xff]  ;;  %v1184_v60 = vld [vmem:[%s1468_s1 + $0x140] sm:$0xff] }
  0x1d   : > { %722 = vmatpush.bf16.msra.mxu0 %v1147_v16  ;;  %v416_v57 = vunpack.c.l.b16 %v312_v56  ;;  %v417_v58 = vunpack.c.h.b16 %v312_v56  ;;  %v309_v14 = vld [vmem:[#allocation2] sm:$0xff] }
  0x1e   : > { %735 = vmatpush.bf16.msra.mxu1 %v1155_v17 }
  0x1f   : > { %748 = vmatpush.bf16.msra.mxu2 %v1163_v18  ;;  %v422_v61 = vpack.c.b16 %v416_v57, %v416_v57  ;;  %v423_v62 = vpack.c.b16 %v417_v58, %v417_v58 }
  0x20   : > { %761 = vmatpush.bf16.msra.mxu3 %v1171_v19  ;;  %v808_v19 = vld [vmem:[%s1470_s3] sm:$0xf] }
  0x21   : > { %723 = vmatpush.bf16.msra.mxu0 %v1146_v20  ;;  %v1218_v20 = vld [vmem:[%s1469_s2] ss:$0 sm:$0xff] }
  0x22   : > { %736 = vmatpush.bf16.msra.mxu1 %v1154_v21  ;;  %v809_v21 = vunpack.c.l.bf16 %v808_v19 }
  0x23   : > { %749 = vmatpush.bf16.msra.mxu2 %v1162_v22 }
  0x24   : > { %762 = vmatpush.bf16.msra.mxu3 %v1170_v23 }
  0x25   : > { %724 = vmatpush.bf16.msra.mxu0 %v1145_v24 }
  0x26   : > { %737 = vmatpush.bf16.msra.mxu1 %v1153_v25 }
  0x27   : > { %750 = vmatpush.bf16.msra.mxu2 %v1161_v27 }
  0x28   : > { %763 = vmatpush.bf16.msra.mxu3 %v1169_v28 }
  0x29   : > { %725 = vmatpush.bf16.msra.mxu0 %v1144_v32 }
  0x2a   : > { %738 = vmatpush.bf16.msra.mxu1 %v1152_v33 }
  0x2b   : > { %751 = vmatpush.bf16.msra.mxu2 %v1160_v36 }
  0x2c   : > { %764 = vmatpush.bf16.msra.mxu3 %v1168_v37  ;;  %726 = vmatmul.bf16.vlgmr.msra.gmra.mxu0 %v418_v40 }
  0x2d   : > { %770 = vmatpush.bf16.msrb.mxu0 %v1183_v34  ;;  %739 = vmatmul.bf16.vlgmr.msra.gmra.mxu1 %v419_v41 }
  0x2e   : > { %783 = vmatpush.bf16.msrb.mxu1 %v1191_v35  ;;  %752 = vmatmul.bf16.vlgmr.msra.gmra.mxu2 %v420_v44 }
  0x2f   : > { %765 = vmatmul.bf16.vlgmr.msra.gmra.mxu3 %v421_v45 }
  0x31   : > { %771 = vmatpush.bf16.msrb.mxu0 %v1182_v42 }
  0x32   : > { %784 = vmatpush.bf16.msrb.mxu1 %v1190_v43 }
  0x35   : > { %772 = vmatpush.bf16.msrb.mxu0 %v1181_v46 }
  0x36   : > { %785 = vmatpush.bf16.msrb.mxu1 %v1189_v47 }
  0x39   : > { %773 = vmatpush.bf16.msrb.mxu0 %v1180_v48 }
  0x3a   : > { %786 = vmatpush.bf16.msrb.mxu1 %v1188_v49 }
  0x3d   : > { %774 = vmatpush.bf16.msrb.mxu0 %v1179_v50 }
  0x3e   : > { %787 = vmatpush.bf16.msrb.mxu1 %v1187_v51 }
  0x41   : > { %775 = vmatpush.bf16.msrb.mxu0 %v1178_v52 }
  0x42   : > { %788 = vmatpush.bf16.msrb.mxu1 %v1186_v53 }
  0x45   : > { %776 = vmatpush.bf16.msrb.mxu0 %v1177_v54 }
  0x46   : > { %789 = vmatpush.bf16.msrb.mxu1 %v1185_v55 }
  0x49   : > { %777 = vmatpush.bf16.msrb.mxu0 %v1176_v59 }
  0x4a   : > { %790 = vmatpush.bf16.msrb.mxu1 %v1184_v60 }
  0x4c   : > { %778 = vmatmul.bf16.vlgmr.msrb.gmra.mxu0 %v422_v61 }
  0x4d   : > { %791 = vmatmul.bf16.vlgmr.msrb.gmra.mxu1 %v423_v62 }
  0xa9   : > { %v727_v0 = vpop.f32.mrf.mxu0 }
  0xaa   : > { %v740_v1 = vpop.f32.mrf.mxu1 }
  0xab   : > { %v741_v8 = vadd.f32 %v740_v1, %v727_v0 }
  0xb1   : > { %v729_v2 = vpop.f32.mrf.mxu0  ;;  %v753_v4 = vpop.f32.mrf.mxu2 }
  0xb2   : > { %v742_v3 = vpop.f32.mrf.mxu1  ;;  %v766_v5 = vpop.f32.mrf.mxu3  ;;  %v754_v9 = vadd.f32 %v753_v4, %v741_v8 }
  0xb4   : > { %v767_v10 = vadd.f32 %v766_v5, %v754_v9 }
  0xb9   : > { %v755_v6 = vpop.f32.mrf.mxu2 }
  0xba   : > { %v768_v7 = vpop.f32.mrf.mxu3 }
  0xc9   : > { %v779_v11 = vpop.f32.mrf.mxu0 }
  0xca   : > { %v792_v12 = vpop.f32.mrf.mxu1  ;;  %v780_v13 = vadd.f32 %v779_v11, %v767_v10 }
  0xcc   : > { %v793_v15 = vadd.f32 %v792_v12, %v780_v13 }
  0xce   : > { %v796_v16 = vadd.f32 %v793_v15, %v309_v14 }
  0xd0   : > { %798 = vst.msk [vmem:[#allocation2] sm:$0xff] %vm307_vm0, %v796_v16 }
  0xd1   : > { %v781_v17 = vpop.f32.mrf.mxu0 }
  0xd2   : > { %v794_v18 = vpop.f32.mrf.mxu1 }
  0xd7   : > { %v802_v22 = vld [vmem:[#allocation2] sm:$0xff] }
  0xd8   : > { %v807_v23 = vadd.f32 %v1218_v20, %v802_v22 }
  0xda   : > { %v810_v24 = vadd.f32 %v809_v21, %v807_v23 }
  0xdc   : > { %v811_v25 = vpack.c.bf16 %v810_v24, %v810_v24 }
  0xde   : > { %813 = vst.msk [vmem:[%s302_s13] sm:$0xf] %vm812_vm1, %v811_v25 }
  0xdf PF: > { %s14_s17 = sadd.s32 1, %s1241_s17   ;;  %s1472_s15 = smov %s1237_s16 }
  0xe0   : > { %p11_p5 = scmp.ge.s32.totalorder %s14_s17, 4   ;;  %s1473_s16 = smov %s1475_s18 }
  0xe2   :  { %13 = sbr.rel (!%p11_p5) target bundleno = 2 (0x2), region = 83 }

// kernel: _lambda_.13
= control target key start
LH: loop header
LB: loop body
LE: loop exit
PB: predicated region body
PF: predicated region fallthrough
CT: control target
= control target key end

     0   :  { %s1034_s12 = smov 0   ;;  %s1036_s13 = smov 0   ;;  %s1178_s0 = inlined_call_operand.vmem [shape: bf16[32,96], index: 0, kind: input, shape index: {}, may-alias: {0,1,2}]   ;;  %s1179_s1 = inlined_call_operand.vmem [shape: bf16[32,96], index: 1, kind: input, shape index: {}, may-alias: {0,1,2}]   ;;  %s1180_s2 = inlined_call_operand.vmem [shape: bf16[32,96], index: 2, kind: input, shape index: {}, may-alias: {0,1,2}]   ;;  %s1181_s3 = inlined_call_operand.vmem [shape: bf16[32,32], index: 3, kind: output, shape index: {}]  }
   0x1   :  { %s1038_s14 = smov 0  }
   0x2 LB: > { %s32_s15 = sadd.s32 1, %s994_s13  ;;  %p858_p0 = scmp.ge.s32.totalorder %s998_s14, 1  ;;  %s998_s14 = sphi %s1038_s14, %s13_s14   ;;  %s994_s13 = sphi %s1036_s13, %s1187_s13   ;;  %s990_s12 = sphi %s1034_s12, %s1186_s12  }
   0x3   : > { %p34_p1 = scmp.ge.s32.totalorder %s32_s15, 2  ;;  %p202_p2 = scmp.lt.s32.totalorder %s998_s14, 3 }
   0x5   : > { %s1189_s15 = smov (%p34_p1, %s32_s15), 0  ;;  %p203_p3 = pnand %p858_p0, %p202_p2 }
   0x6   : > { %s859_s16 = sshll.u32 (!%p203_p3), %s990_s12, 1  ;;  %s1000_s21 = smov (!%p203_p3), 96  }
   0x7   : > { %206 = sbr.rel (%p203_p3) target bundleno = 955 (0x3bb), region = 32  ;;  %p252_p4 = scmp.lt.s32.totalorder (!%p203_p3), %s859_s16, 3 }
   0x8   : > { %s1001_s22 = smov (!%p203_p3), 88   ;;  %s1002_s26 = smov (!%p203_p3), 120  }
   0x9   : > { %s1003_s30 = smov (!%p203_p3), 64   ;;  %s1004_s4 = smov (!%p203_p3), 80  }
   0xa   : > { %s1005_s5 = smov (!%p203_p3), 72   ;;  %s1006_s6 = smov (!%p203_p3), 112  }
   0xb   : > { %s1007_s7 = smov (!%p203_p3), 56   ;;  %s1008_s8 = smov (!%p203_p3), 104  }
   0xc   : > { %s1191_s16 = smov (!%p252_p4, %s859_s16), 3  ;;  %vm312_vm0 = vcmask 64512   ;;  %v291_v13 = vlaneseq  ;;  %vm335_vm2 = vcmask 130048   ;;  %s1009_s9 = smov 48  }
   0xd   : > { %s1052_s17 = sshll.u32 %s1191_s16, 2  ;;  %s1010_s10 = smov 40  }
   0xe   : > { %s268_s20 = scalar_lea.vmem %s1179_s1, %s1052_s17  ;;  %s258_s25 = scalar_lea.vmem %s1178_s0, %s1052_s17  ;;  %v1073_v14 = vand.u32 127, %v291_v13 }
   0xf   : > { %v885_v0 = vld [vmem:[%s268_s20] sm:$0xff]  ;;  %s277_s29 = scalar_lea.vmem %s1180_s2, %s1052_s17  ;;  %s1011_s11 = smov 8  }
  0x10   : > { %310 = vrot.lane.b32.xlu0 %v885_v0, %s1000_s21  ;;  %415 = vrot.lane.b32.xlu1 %v885_v0, %s1001_s22  ;;  %v888_v1 = vld [vmem:[%s258_s25] sm:$0xff]   ;;  %vm293_vm1 = vcmp.lt.s32.totalorder %v1073_v14, 10  ;;  %s1012_s12 = smov 24   ;;  %s1013_s16 = smov 16  }
  0x11   : > { %v889_v2 = vunpack.c.l.bf16 %v888_v1  ;;  %v890_v3 = vunpack.c.h.bf16 %v888_v1  ;;  %v1070_v12 = vld [vmem:[%s277_s29] sm:$0xff]  ;;  %s287_s20 = scalar_lea.vmem %s1181_s3, %s1052_s17 }
  0x13   : > { %v298_v4 = vmul.f32 0.35355338, %v889_v2  ;;  %v299_v5 = vmul.f32 0.35355338, %v890_v3 }
  0x15   : > { %v300_v6 = vpack.c.bf16 %v299_v5, %v298_v4 }
  0x17   : > { %413 = vrot.lane.b32.xlu2 %v300_v6, %s1002_s26 }
  0x1f   : > { %360 = vrot.lane.b32.xlu2 %v1070_v12, %s1003_s30 }
  0x27   : > { %512 = vrot.lane.b32.xlu2 %v885_v0, %s1004_s4 }
  0x2f   : > { %609 = vrot.lane.b32.xlu2 %v885_v0, %s1005_s5 }
  0x37   : > { %510 = vrot.lane.b32.xlu2 %v300_v6, %s1006_s6 }
  0x71   : > { %v414_v11 = vpop.permute.xlu2 %413 }
  0x79   : > { %v361_v23 = vpop.permute.xlu2 %360 }
  0x7a   : > { %373 = vmatpush.bf16.msra.mxu1 %v361_v23 }
  0x81   : > { %v513_v28 = vpop.permute.xlu2 %512 }
  0x82   : > { %v311_v7 = vpop.permute.xlu0 %310  ;;  %v416_v8 = vpop.permute.xlu1 %415  ;;  %v518_v29 = vsel %vm312_vm0, %v513_v28, 0 }
  0x83   : > { %v317_v9 = vsel %vm312_vm0, %v311_v7, 0  ;;  %v421_v10 = vsel %vm312_vm0, %v416_v8, 0  ;;  %527 = vmatpush.bf16.xpose.msrb.mxu1 %v518_v29 }
  0x84   : > { %326 = vmatpush.bf16.xpose.msra.mxu0 %v317_v9  ;;  %430 = vmatpush.bf16.xpose.msra.mxu2 %v421_v10 }
  0x89   : > { %v610_v30 = vpop.permute.xlu2 %609 }
  0x8a   : > { %v615_v31 = vsel %vm312_vm0, %v610_v30, 0 }
  0x8b   : > { %871 = vmatmul.msk.bf16.vlgmr.msra.gmra.mxu0 %vm312_vm0, %v300_v6  ;;  %877 = vmatmul.msk.bf16.vlgmr.msra.gmra.mxu2 %vm312_vm0, %v414_v11 }
  0x8c   : > { %624 = vmatpush.bf16.xpose.msrb.mxu0 %v615_v31 }
  0x91   : > { %v511_v42 = vpop.permute.xlu2 %510 }
 0x108   : > { %v328_v15 = vpop.f32.mrf.mxu0 }
 0x109   : > { %v333_v16 = vsel %vm293_vm1, %v328_v15, -1e+30 }
 0x10a   : > { %v336_v17 = vsel %vm335_vm2, %v333_v16, -inf }
 0x10b   : > { %337 = vmax.xlane.f32.xlu0 %v336_v17 }
 0x10e   : > { %v432_v21 = vpop.f32.mrf.mxu2 }
 0x10f   : > { %v437_v24 = vsel %vm293_vm1, %v432_v21, -1e+30 }
 0x110   : > { %v330_v18 = vpop.f32.mrf.mxu0  ;;  %v439_v26 = vsel %vm335_vm2, %v437_v24, -inf }
 0x111   : > { %v334_v19 = vsel %vm293_vm1, %v330_v18, -1e+30  ;;  %440 = vmax.xlane.f32.xlu2 %v439_v26 }
 0x112   : > { %v339_v20 = vsel %vm335_vm2, %v334_v19, -inf }
 0x113   : > { %340 = vmax.xlane.f32.xlu1 %v339_v20 }
 0x116   : > { %v434_v22 = vpop.f32.mrf.mxu2 }
 0x117   : > { %v438_v25 = vsel %vm293_vm1, %v434_v22, -1e+30 }
 0x118   : > { %v442_v27 = vsel %vm335_vm2, %v438_v25, -inf }
 0x11f   : > { %458 = vrot.lane.b32.xlu0 %v1070_v12, %s1007_s7 }
 0x12c   : > { %607 = vrot.lane.b32.xlu1 %v300_v6, %s1008_s8 }
 0x156   : > { %443 = vmax.xlane.f32.xlu1 %v442_v27 }
 0x17e   : > { %v338_v32 = vpop.xlane.xlu0 %337 }
 0x17f   : > { %v342_v33 = vsub.f32 %v333_v16, %v338_v32 }
 0x181   : > { %v344_v34 = vmul.f32 1.442695, %v342_v33 }
 0x183   : > { %944 = vpow2.f32 %v344_v34 }
 0x184   : > { %v441_v44 = vpop.xlane.xlu2 %440 }
 0x185   : > { %v445_v46 = vsub.f32 %v437_v24, %v441_v44 }
 0x186   : > { %v341_v35 = vpop.xlane.xlu1 %340 }
 0x187   : > { %v343_v36 = vsub.f32 %v334_v19, %v341_v35  ;;  %v447_v48 = vmul.f32 1.442695, %v445_v46 }
 0x189   : > { %v346_v37 = vmul.f32 1.442695, %v343_v36  ;;  %v1091_v38 = vpop.eup %944 }
 0x18a   : > { %v348_v29 = vsel %vm335_vm2, %v1091_v38, 0.0 }
 0x18b   : > { %946 = vpow2.f32 %v346_v37 }
 0x18c   : > { %948 = vpow2.f32 %v447_v48 }
 0x191   : > { %v1093_v39 = vpop.eup %946  ;;  %v459_v43 = vpop.permute.xlu0 %458 }
 0x192   : > { %v354_v40 = vpack.c.bf16 %v1093_v39, %v1091_v38  ;;  %471 = vmatpush.bf16.msra.mxu3 %v459_v43  ;;  %v949_v50 = vpop.eup %948  ;;  %v351_v30 = vsel %vm335_vm2, %v1093_v39, 0.0 }
 0x193   : > { %v451_v1 = vsel %vm335_vm2, %v949_v50, 0.0 }
 0x194   : > { %876 = vmatmul.msk.bf16.vlgmr.msra.gmra.mxu1 %vm335_vm2, %v354_v40 }
 0x19e   : > { %v608_v41 = vpop.permute.xlu1 %607 }
 0x19f   : > { %881 = vmatmul.msk.bf16.vlgmr.msrb.gmra.mxu0 %vm312_vm0, %v608_v41 }
 0x1a4   : > { %879 = vmatmul.msk.bf16.vlgmr.msrb.gmra.mxu1 %vm312_vm0, %v511_v42 }
 0x1c9   : > { %v444_v45 = vpop.xlane.xlu1 %443 }
 0x1ca   : > { %v446_v47 = vsub.f32 %v438_v25, %v444_v45 }
 0x1cc   : > { %v449_v49 = vmul.f32 1.442695, %v446_v47 }
 0x1ce   : > { %950 = vpow2.f32 %v449_v49 }
 0x1d4   : > { %v951_v51 = vpop.eup %950 }
 0x1d5   : > { %v457_v52 = vpack.c.bf16 %v951_v51, %v949_v50  ;;  %v454_v4 = vsel %vm335_vm2, %v951_v51, 0.0 }
 0x1d7   : > { %878 = vmatmul.msk.bf16.vlgmr.msra.gmra.mxu3 %vm335_vm2, %v457_v52 }
 0x211   : > { %v1101_v53 = vpop.f32.mrf.mxu1 }
 0x219   : > { %v1103_v54 = vpop.f32.mrf.mxu1 }
 0x21c   : > { %v626_v55 = vpop.f32.mrf.mxu0 }
 0x21d   : > { %v631_v56 = vsel %vm293_vm1, %v626_v55, -1e+30 }
 0x21e   : > { %v633_v57 = vsel %vm335_vm2, %v631_v56, -inf }
 0x21f   : > { %634 = vmax.xlane.f32.xlu1 %v633_v57 }
 0x221   : > { %v529_v58 = vpop.f32.mrf.mxu1 }
 0x222   : > { %v534_v59 = vsel %vm293_vm1, %v529_v58, -1e+30 }
 0x223   : > { %v536_v60 = vsel %vm335_vm2, %v534_v59, -inf }
 0x224   : > { %537 = vmax.xlane.f32.xlu0 %v536_v60  ;;  %v628_v61 = vpop.f32.mrf.mxu0 }
 0x225   : > { %v632_v62 = vsel %vm293_vm1, %v628_v61, -1e+30 }
 0x226   : > { %v636_v63 = vsel %vm335_vm2, %v632_v62, -inf }
 0x227   : > { %637 = vmax.xlane.f32.xlu2 %v636_v63 }
 0x229   : > { %v531_v0 = vpop.f32.mrf.mxu1 }
 0x22a   : > { %v535_v2 = vsel %vm293_vm1, %v531_v0, -1e+30 }
 0x22b   : > { %v539_v3 = vsel %vm335_vm2, %v535_v2, -inf }
 0x22c   : > { %452 = vadd.xlane.f32.xlu0 %v451_v1 }
 0x22f   : > { %540 = vmax.xlane.f32.xlu2 %v539_v3 }
 0x238   : > { %555 = vrot.lane.b32.xlu1 %v1070_v12, %s1009_s9 }
 0x247   : > { %652 = vrot.lane.b32.xlu2 %v1070_v12, %s1010_s10 }
 0x25a   : > { %v473_v40 = vpop.f32.mrf.mxu3 }
 0x262   : > { %455 = vadd.xlane.f32.xlu1 %v454_v4  ;;  %v475_v55 = vpop.f32.mrf.mxu3 }
 0x292   : > { %v635_v5 = vpop.xlane.xlu1 %634 }
 0x293   : > { %v639_v8 = vsub.f32 %v631_v56, %v635_v5 }
 0x295   : > { %v641_v13 = vmul.f32 1.442695, %v639_v8 }
 0x297   : > { %v538_v6 = vpop.xlane.xlu0 %537 }
 0x298   : > { %v542_v7 = vsub.f32 %v534_v59, %v538_v6 }
 0x29a   : > { %v544_v9 = vmul.f32 1.442695, %v542_v7  ;;  %v638_v10 = vpop.xlane.xlu2 %637 }
 0x29b   : > { %v640_v11 = vsub.f32 %v632_v62, %v638_v10 }
 0x29c   : > { %952 = vpow2.f32 %v544_v9 }
 0x29d   : > { %v643_v14 = vmul.f32 1.442695, %v640_v11  ;;  %954 = vpow2.f32 %v641_v13 }
 0x29f   : > { %956 = vpow2.f32 %v643_v14  ;;  %v453_v31 = vpop.xlane.xlu0 %452 }
 0x2a0   : > { %v489_v43 = vand.u32 2147483648, %v453_v31  ;;  %vm483_vm4 = vweird.f32 %v453_v31  ;;  %v487_v38 = vand.u32 2147483647, %v453_v31 }
 0x2a2   : > { %v953_v15 = vpop.eup %952  ;;  %v541_v16 = vpop.xlane.xlu2 %540  ;;  %v490_v48 = vor.u32 1.1754944e-38, %v489_v43  ;;  %vm488_vm7 = vcmp.eq.f32.partialorder %v487_v38, 8.507059e+37 }
 0x2a3   : > { %v543_v17 = vsub.f32 %v535_v2, %v541_v16  ;;  %v548_v12 = vsel %vm335_vm2, %v953_v15, 0.0  ;;  %v955_v19 = vpop.eup %954 }
 0x2a4   : > { %549 = vadd.xlane.f32.xlu0 %v548_v12  ;;  %v645_v23 = vsel %vm335_vm2, %v955_v19, 0.0 }
 0x2a5   : > { %v546_v18 = vmul.f32 1.442695, %v543_v17  ;;  %v957_v20 = vpop.eup %956 }
 0x2a6   : > { %v651_v24 = vpack.c.bf16 %v957_v20, %v955_v19  ;;  %v648_v28 = vsel %vm335_vm2, %v957_v20, 0.0 }
 0x2a7   : > { %958 = vpow2.f32 %v546_v18 }
 0x2a8   : > { %960 = vrcp.f32 %v453_v31 }
 0x2aa   : > { %v653_v21 = vpop.permute.xlu2 %652  ;;  %v556_v22 = vpop.permute.xlu1 %555 }
 0x2ab   : > { %568 = vmatpush.bf16.msrb.mxu3 %v556_v22  ;;  %665 = vmatpush.bf16.msrb.mxu2 %v653_v21 }
 0x2ac   : > { %646 = vadd.xlane.f32.xlu0 %v645_v23 }
 0x2ad   : > { %v959_v25 = vpop.eup %958 }
 0x2ae   : > { %882 = vmatmul.msk.bf16.vlgmr.msrb.gmra.mxu2 %vm335_vm2, %v651_v24  ;;  %v551_v26 = vsel %vm335_vm2, %v959_v25, 0.0  ;;  %v554_v27 = vpack.c.bf16 %v959_v25, %v953_v15  ;;  %v961_v32 = vpop.eup %960 }
 0x2af   : > { %552 = vadd.xlane.f32.xlu2 %v551_v26  ;;  %v479_v33 = vmul.f32 %v961_v32, %v453_v31  ;;  %vm484_vm3 = vweird.f32 %v961_v32 }
 0x2b0   : > { %880 = vmatmul.msk.bf16.vlgmr.msrb.gmra.mxu3 %vm335_vm2, %v554_v27  ;;  %vm485_vm5 = vmor %vm483_vm4, %vm484_vm3 }
 0x2b1   : > { %v480_v34 = vsub.f32 1.0, %v479_v33 }
 0x2b3   : > { %v481_v36 = vmul.f32 %v961_v32, %v480_v34 }
 0x2b4   : > { %649 = vadd.xlane.f32.xlu0 %v648_v28 }
 0x2b5   : > { %v482_v41 = vadd.f32 %v961_v32, %v481_v36 }
 0x2b7   : > { %v486_v47 = vsel %vm485_vm5, %v961_v32, %v482_v41 }
 0x2b8   : > { %v491_v51 = vsel %vm488_vm7, %v490_v48, %v486_v47 }
 0x2b9   : > { %v508_v57 = vmul.f32 %v491_v51, %v473_v40 }
 0x2bc   : > { %349 = vadd.xlane.f32.xlu0 %v348_v29 }
 0x2c4   : > { %352 = vadd.xlane.f32.xlu0 %v351_v30 }
 0x2d5   : > { %v456_v35 = vpop.xlane.xlu1 %455 }
 0x2d6   : > { %962 = vrcp.f32 %v456_v35  ;;  %v504_v39 = vand.u32 2147483648, %v456_v35  ;;  %v502_v46 = vand.u32 2147483647, %v456_v35  ;;  %vm498_vm8 = vweird.f32 %v456_v35 }
 0x2d8   : > { %v505_v50 = vor.u32 1.1754944e-38, %v504_v39  ;;  %vm503_vm10 = vcmp.eq.f32.partialorder %v502_v46, 8.507059e+37 }
 0x2dc   : > { %v963_v37 = vpop.eup %962 }
 0x2dd   : > { %v494_v42 = vmul.f32 %v963_v37, %v456_v35  ;;  %vm499_vm6 = vweird.f32 %v963_v37 }
 0x2de   : > { %vm500_vm9 = vmor %vm498_vm8, %vm499_vm6 }
 0x2df   : > { %v495_v44 = vsub.f32 1.0, %v494_v42 }
 0x2e1   : > { %v496_v45 = vmul.f32 %v963_v37, %v495_v44 }
 0x2e3   : > { %v497_v49 = vadd.f32 %v963_v37, %v496_v45 }
 0x2e5   : > { %v501_v52 = vsel %vm500_vm9, %v963_v37, %v497_v49 }
 0x2e6   : > { %v506_v56 = vsel %vm503_vm10, %v505_v50, %v501_v52 }
 0x2e7   : > { %v509_v58 = vmul.f32 %v506_v56, %v475_v55 }
 0x2e9   : > { %v929_v59 = vpack.i.bf16 %v509_v58, %v508_v57 }
 0x2eb   : > { %930 = vrot.lane.b32.xlu1 %v929_v59, %s1011_s11 }
 0x317   : > { %v1131_v60 = vpop.xlane.xlu0 %549 }
 0x318   : > { %964 = vrcp.f32 %v1131_v60  ;;  %vm580_vm12 = vweird.f32 %v1131_v60  ;;  %v586_v19 = vand.u32 2147483648, %v1131_v60  ;;  %v584_v32 = vand.u32 2147483647, %v1131_v60 }
 0x31a   : > { %v587_v41 = vor.u32 1.1754944e-38, %v586_v19 }
 0x31e   : > { %v1134_v63 = vpop.eup %964 }
 0x31f   : > { %v647_v61 = vpop.xlane.xlu0 %646  ;;  %v576_v1 = vmul.f32 %v1134_v63, %v1131_v60  ;;  %vm581_vm14 = vweird.f32 %v1134_v63 }
 0x320   : > { %966 = vrcp.f32 %v647_v61  ;;  %v683_v12 = vand.u32 2147483648, %v647_v61  ;;  %vm677_vm13 = vweird.f32 %v647_v61  ;;  %v681_v18 = vand.u32 2147483647, %v647_v61  ;;  %vm1151_vm4 = vmor %vm580_vm12, %vm581_vm14 }
 0x321   : > { %v577_v7 = vsub.f32 1.0, %v576_v1 }
 0x322   : > { %v553_v62 = vpop.xlane.xlu2 %552  ;;  %v684_v28 = vor.u32 1.1754944e-38, %v683_v12  ;;  %vm682_vm6 = vcmp.eq.f32.partialorder %v681_v18, 8.507059e+37 }
 0x323   : > { %968 = vrcp.f32 %v553_v62  ;;  %v578_v13 = vmul.f32 %v1134_v63, %v577_v7  ;;  %v601_v31 = vand.u32 2147483648, %v553_v62  ;;  %vm595_vm8 = vweird.f32 %v553_v62 }
 0x324   : > { %v599_v33 = vand.u32 2147483647, %v553_v62 }
 0x325   : > { %v579_v22 = vadd.f32 %v1134_v63, %v578_v13  ;;  %v602_v38 = vor.u32 1.1754944e-38, %v601_v31 }
 0x326   : > { %v967_v0 = vpop.eup %966  ;;  %vm600_vm12 = vcmp.eq.f32.partialorder %v599_v33, 8.507059e+37 }
 0x327   : > { %v673_v2 = vmul.f32 %v967_v0, %v647_v61  ;;  %v650_v3 = vpop.xlane.xlu0 %649  ;;  %vm678_vm11 = vweird.f32 %v967_v0  ;;  %v583_v37 = vsel %vm1151_vm4, %v1134_v63, %v579_v22 }
 0x328   : > { %970 = vrcp.f32 %v650_v3  ;;  %vm1142_vm15 = vmor %vm677_vm13, %vm678_vm11  ;;  %v698_v24 = vand.u32 2147483648, %v650_v3  ;;  %v696_v26 = vand.u32 2147483647, %v650_v3  ;;  %vm692_vm5 = vweird.f32 %v650_v3 }
 0x329   : > { %v969_v4 = vpop.eup %968  ;;  %v674_v5 = vsub.f32 1.0, %v673_v2  ;;  %vm585_vm11 = vcmp.eq.f32.partialorder %v584_v32, 8.507059e+37 }
 0x32a   : > { %v591_v6 = vmul.f32 %v969_v4, %v553_v62  ;;  %vm596_vm3 = vweird.f32 %v969_v4  ;;  %v699_v36 = vor.u32 1.1754944e-38, %v698_v24  ;;  %vm697_vm10 = vcmp.eq.f32.partialorder %v696_v26, 8.507059e+37 }
 0x32b   : > { %v675_v9 = vmul.f32 %v967_v0, %v674_v5  ;;  %vm597_vm9 = vmor %vm595_vm8, %vm596_vm3  ;;  %v588_v45 = vsel %vm585_vm11, %v587_v41, %v583_v37  ;;  %vm737_vm8 = vcmask 257024  }
 0x32c   : > { %v592_v8 = vsub.f32 1.0, %v591_v6 }
 0x32d   : > { %v676_v14 = vadd.f32 %v967_v0, %v675_v9 }
 0x32e   : > { %v971_v10 = vpop.eup %970  ;;  %v593_v15 = vmul.f32 %v969_v4, %v592_v8 }
 0x32f   : > { %v688_v11 = vmul.f32 %v971_v10, %v650_v3  ;;  %vm693_vm1 = vweird.f32 %v971_v10  ;;  %v680_v25 = vsel %vm1142_vm15, %v967_v0, %v676_v14  ;;  %v350_v52 = vpop.xlane.xlu0 %349 }
 0x330   : > { %v594_v27 = vadd.f32 %v969_v4, %v593_v15  ;;  %vm694_vm7 = vmor %vm692_vm5, %vm693_vm1  ;;  %v685_v34 = vsel %vm682_vm6, %v684_v28, %v680_v25  ;;  %972 = vrcp.f32 %v350_v52  ;;  %vm385_vm15 = vweird.f32 %v350_v52 }
 0x331   : > { %v689_v16 = vsub.f32 1.0, %v688_v11  ;;  %v667_v17 = vpop.f32.mrf.mxu2  ;;  %v391_v2 = vand.u32 2147483648, %v350_v52 }
 0x332   : > { %v598_v40 = vsel %vm597_vm9, %v969_v4, %v594_v27  ;;  %v702_v44 = vmul.f32 %v685_v34, %v667_v17  ;;  %v389_v4 = vand.u32 2147483647, %v350_v52 }
 0x333   : > { %v570_v21 = vpop.f32.mrf.mxu3  ;;  %v690_v23 = vmul.f32 %v971_v10, %v689_v16  ;;  %v603_v47 = vsel %vm600_vm12, %v602_v38, %v598_v40  ;;  %v392_v8 = vor.u32 1.1754944e-38, %v391_v2 }
 0x334   : > { %v605_v48 = vmul.f32 %v588_v45, %v570_v21  ;;  %vm390_vm5 = vcmp.eq.f32.partialorder %v389_v4, 8.507059e+37 }
 0x335   : > { %v691_v30 = vadd.f32 %v971_v10, %v690_v23 }
 0x336   : > { %v973_v56 = vpop.eup %972 }
 0x337   : > { %v695_v35 = vsel %vm694_vm7, %v971_v10, %v691_v30  ;;  %v353_v55 = vpop.xlane.xlu0 %352  ;;  %v381_v58 = vmul.f32 %v973_v56, %v350_v52  ;;  %vm386_vm13 = vweird.f32 %v973_v56  ;;  %vm732_vm7 = vcmask 195584  }
 0x338   : > { %v700_v43 = vsel %vm697_vm10, %v699_v36, %v695_v35  ;;  %974 = vrcp.f32 %v353_v55  ;;  %v406_v3 = vand.u32 2147483648, %v353_v55  ;;  %vm387_vm1 = vmor %vm385_vm15, %vm386_vm13  ;;  %vm400_vm3 = vweird.f32 %v353_v55 }
 0x339   : > { %v669_v42 = vpop.f32.mrf.mxu2  ;;  %v382_v60 = vsub.f32 1.0, %v381_v58  ;;  %v404_v5 = vand.u32 2147483647, %v353_v55 }
 0x33a   : > { %v703_v39 = vmul.f32 %v700_v43, %v669_v42  ;;  %v407_v9 = vor.u32 1.1754944e-38, %v406_v3 }
 0x33b   : > { %v572_v46 = vpop.f32.mrf.mxu3  ;;  %v383_v62 = vmul.f32 %v973_v56, %v382_v60  ;;  %vm405_vm6 = vcmp.eq.f32.partialorder %v404_v5, 8.507059e+37 }
 0x33c   : > { %v939_v49 = vpack.i.bf16 %v703_v39, %v702_v44  ;;  %v606_v50 = vmul.f32 %v603_v47, %v572_v46 }
 0x33d   : > { %v384_v0 = vadd.f32 %v973_v56, %v383_v62 }
 0x33e   : > { %v934_v51 = vpack.i.bf16 %v606_v50, %v605_v48  ;;  %940 = vrot.lane.b32.xlu2 %v939_v49, %s1012_s12  ;;  %v975_v57 = vpop.eup %974 }
 0x33f   : > { %v396_v59 = vmul.f32 %v975_v57, %v353_v55  ;;  %vm401_vm14 = vweird.f32 %v975_v57  ;;  %v388_v6 = vsel %vm387_vm1, %v973_v56, %v384_v0 }
 0x340   : > { %935 = vrot.lane.b32.xlu0 %v934_v51, %s1013_s16  ;;  %vm402_vm4 = vmor %vm400_vm3, %vm401_vm14  ;;  %v393_v11 = vsel %vm390_vm5, %v392_v8, %v388_v6 }
 0x341   : > { %v397_v61 = vsub.f32 1.0, %v396_v59  ;;  %v410_v17 = vmul.f32 %v393_v11, %v1101_v53 }
 0x343   : > { %v398_v63 = vmul.f32 %v975_v57, %v397_v61 }
 0x345   : > { %v399_v1 = vadd.f32 %v975_v57, %v398_v63 }
 0x347   : > { %v403_v7 = vsel %vm402_vm4, %v975_v57, %v399_v1 }
 0x348   : > { %v408_v13 = vsel %vm405_vm6, %v407_v9, %v403_v7 }
 0x349   : > { %v411_v12 = vmul.f32 %v408_v13, %v1103_v54 }
 0x35d   : > { %v931_v10 = vpop.permute.xlu1 %930 }
 0x35e   : > { %v933_v14 = vunpack.i.h.bf16 %v931_v10  ;;  %v932_v15 = vunpack.i.l.bf16 %v931_v10 }
 0x360   : > { %v729_v21 = vsel %vm312_vm0, %v411_v12, %v933_v14  ;;  %v728_v22 = vsel %vm312_vm0, %v410_v17, %v932_v15 }
 0x398   : > { %v941_v16 = vpop.permute.xlu2 %940 }
 0x399   : > { %v943_v23 = vunpack.i.h.bf16 %v941_v16  ;;  %v942_v24 = vunpack.i.l.bf16 %v941_v16 }
 0x3b2   : > { %v936_v18 = vpop.permute.xlu0 %935 }
 0x3b3   : > { %v938_v19 = vunpack.i.h.bf16 %v936_v18  ;;  %v937_v20 = vunpack.i.l.bf16 %v936_v18 }
 0x3b5   : > { %v730_v25 = vsel %vm335_vm2, %v728_v22, %v937_v20  ;;  %v731_v26 = vsel %vm335_vm2, %v729_v21, %v938_v19 }
 0x3b6   : > { %v733_v53 = vsel %vm732_vm7, %v730_v25, %v942_v24  ;;  %v734_v54 = vsel %vm732_vm7, %v731_v26, %v943_v23 }
 0x3b7   : > { %v735_v27 = vpack.c.bf16 %v733_v53, %v733_v53  ;;  %v736_v28 = vpack.c.bf16 %v734_v54, %v734_v54 }
 0x3b9   : > { %738 = vst.msk [vmem:[%s287_s20] sm:$0xf] %vm737_vm8, %v735_v27 }
 0x3ba   : > { %739 = vst.msk [vmem:[%s287_s20 + $0x4] sm:$0xf] %vm737_vm8, %v736_v28 }
 0x3bb PF: > { %s13_s14 = sadd.s32 1, %s998_s14   ;;  %s1186_s12 = smov %s994_s13 }
 0x3bc   : > { %p10_p5 = scmp.ge.s32.totalorder %s13_s14, 4   ;;  %s1187_s13 = smov %s1189_s15 }
 0x3be   :  { %12 = sbr.rel (!%p10_p5) target bundleno = 2 (0x2), region = 68 }

// kernel: _lambda_.14
= control target key start
LH: loop header
LB: loop body
LE: loop exit
PB: predicated region body
PF: predicated region fallthrough
CT: control target
= control target key end

     0   :  { %vm22_vm0 = vcmask 261120   ;;  %v170_v1 = vmov 0.0   ;;  %vm126_vm1 = vcmask 257024   ;;  %s243_s1 = inlined_call_operand.vmem [shape: bf16[32,32], index: 1, kind: input, shape index: {}]   ;;  %s244_s2 = inlined_call_operand.vmem [shape: f32[1,32], index: 2, kind: input, shape index: {}]   ;;  %s245_s0 = inlined_call_operand.vmem [shape: bf16[32,32], index: 0, kind: input, shape index: {}]   ;;  %s246_s3 = inlined_call_operand.vmem [shape: bf16[32,32], index: 3, kind: input, shape index: {}]   ;;  %s247_s4 = inlined_call_operand.vmem [shape: bf16[32,32], index: 4, kind: output, shape index: {}]  }
   0x1   :  { %v156_v0 = vld [vmem:[%s243_s1 + $0x8] sm:$0xff]  ;;  %23 = vst.msk [vmem:[#allocation2] sm:$0xff] %vm22_vm0, %v170_v1  ;;  %v155_v2 = vld [vmem:[%s243_s1] sm:$0xff] }
   0x2   :  { %24 = vst.msk [vmem:[#allocation2 + $0x8] sm:$0xff] %vm22_vm0, %v170_v1  ;;  %74 = vmatpush.bf16.msra.mxu0 %v156_v0  ;;  %166 = vmatpush.bf16.msra.mxu1 %v156_v0  ;;  %v153_v3 = vld [vmem:[%s245_s0] sm:$0xff]  ;;  %v154_v4 = vld [vmem:[%s245_s0 + $0x8] sm:$0xff] }
   0x3   :  { %25 = vst.msk [vmem:[#allocation2 + $0x10] sm:$0xff] %vm22_vm0, %v170_v1  ;;  %v158_v11 = vld [vmem:[%s246_s3] sm:$0xff]   ;;  %v165_v15 = vld [vmem:[%s246_s3 + $0x8] sm:$0xff]  }
   0x4   :  { %26 = vst.msk [vmem:[#allocation2 + $0x18] sm:$0xff] %vm22_vm0, %v170_v1  ;;  %v169_v14 = vld [vmem:[%s244_s2] ss:$0 sm:$0xff]  ;;  %v159_v18 = vunpack.c.l.bf16 %v158_v11  ;;  %v163_v22 = vunpack.c.l.bf16 %v165_v15  ;;  %v160_v30 = vunpack.c.h.bf16 %v158_v11  ;;  %v164_v32 = vunpack.c.h.bf16 %v165_v15 }
   0x6   :  { %75 = vmatpush.bf16.msra.mxu0 %v155_v2  ;;  %167 = vmatpush.bf16.msra.mxu1 %v155_v2 }
   0x8   :  { %v27_v5 = vld [vmem:[#allocation2] sm:$0xff] }
   0x9   :  { %151 = vmatmul.msk.bf16.vlgmr.msra.gmra.mxu0 %vm22_vm0, %v153_v3  ;;  %152 = vmatmul.msk.bf16.vlgmr.msra.gmra.mxu1 %vm22_vm0, %v154_v4  ;;  %v28_v12 = vld [vmem:[#allocation2 + $0x8] sm:$0xff] }
   0xa   :  { %v29_v6 = vld [vmem:[#allocation2 + $0x10] sm:$0xff] }
   0xb   :  { %v30_v13 = vld [vmem:[#allocation2 + $0x18] sm:$0xff] }
  0x86   :  { %v77_v7 = vpop.f32.mrf.mxu0  ;;  %v82_v8 = vpop.f32.mrf.mxu1 }
  0x87   :  { %v87_v9 = vadd.f32 %v77_v7, %v27_v5  ;;  %v89_v10 = vadd.f32 %v82_v8, %v29_v6 }
  0x89   :  { %91 = vst.msk [vmem:[#allocation2] sm:$0xff] %vm22_vm0, %v87_v9 }
  0x8a   :  { %93 = vst.msk [vmem:[#allocation2 + $0x10] sm:$0xff] %vm22_vm0, %v89_v10 }
  0x8e   :  { %v79_v16 = vpop.f32.mrf.mxu0  ;;  %v84_v17 = vpop.f32.mrf.mxu1 }
  0x8f   :  { %v88_v19 = vadd.f32 %v79_v16, %v28_v12  ;;  %v90_v20 = vadd.f32 %v84_v17, %v30_v13 }
  0x90   :  { %v98_v21 = vld [vmem:[#allocation2] sm:$0xff] }
  0x91   :  { %v106_v23 = vadd.f32 %v169_v14, %v98_v21  ;;  %v100_v24 = vld [vmem:[#allocation2 + $0x10] sm:$0xff]  ;;  %92 = vst.msk [vmem:[#allocation2 + $0x8] sm:$0xff] %vm22_vm0, %v88_v19 }
  0x92   :  { %v108_v25 = vadd.f32 %v169_v14, %v100_v24  ;;  %94 = vst.msk [vmem:[#allocation2 + $0x18] sm:$0xff] %vm22_vm0, %v90_v20 }
  0x93   :  { %v118_v26 = vadd.f32 %v159_v18, %v106_v23 }
  0x94   :  { %v120_v27 = vadd.f32 %v163_v22, %v108_v25 }
  0x95   :  { %v122_v28 = vpack.c.bf16 %v118_v26, %v118_v26 }
  0x96   :  { %v124_v29 = vpack.c.bf16 %v120_v27, %v120_v27 }
  0x97   :  { %127 = vst.msk [vmem:[%s247_s4] sm:$0xf] %vm126_vm1, %v122_v28 }
  0x98   :  { %129 = vst.msk [vmem:[%s247_s4 + $0x8] sm:$0xf] %vm126_vm1, %v124_v29  ;;  %v99_v31 = vld [vmem:[#allocation2 + $0x8] sm:$0xff] }
  0x99   :  { %v107_v33 = vadd.f32 %v169_v14, %v99_v31  ;;  %v101_v34 = vld [vmem:[#allocation2 + $0x18] sm:$0xff] }
  0x9a   :  { %v109_v35 = vadd.f32 %v169_v14, %v101_v34 }
  0x9b   :  { %v119_v36 = vadd.f32 %v160_v30, %v107_v33 }
  0x9c   :  { %v121_v37 = vadd.f32 %v164_v32, %v109_v35 }
  0x9d   :  { %v123_v38 = vpack.c.bf16 %v119_v36, %v119_v36 }
  0x9e   :  { %v125_v39 = vpack.c.bf16 %v121_v37, %v121_v37 }
  0x9f   :  { %128 = vst.msk [vmem:[%s247_s4 + $0x4] sm:$0xf] %vm126_vm1, %v123_v38 }
  0xa0   :  { %130 = vst.msk [vmem:[%s247_s4 + $0xc] sm:$0xf] %vm126_vm1, %v125_v39 }

// kernel: _lambda_.20
= control target key start
LH: loop header
LB: loop body
LE: loop exit
PB: predicated region body
PF: predicated region fallthrough
CT: control target
= control target key end

     0   :  { %vm16_vm0 = vcmask 257024   ;;  %v68_v3 = vmov 32.0   ;;  %s104_s0 = inlined_call_operand.vmem [shape: bf16[4,32], index: 0, kind: input, shape index: {}]   ;;  %s105_s1 = inlined_call_operand.vmem [shape: f32[1,32], index: 1, kind: input, shape index: {}]   ;;  %s106_s2 = inlined_call_operand.vmem [shape: f32[1,32], index: 2, kind: input, shape index: {}]   ;;  %s107_s3 = inlined_call_operand.vmem [shape: f32[4,32], index: 3, kind: output, shape index: {}]  }
   0x1   :  { %v14_v0 = vld [vmem:[%s104_s0] sm:$0x3]  ;;  %64 = vrcp.f32 %v68_v3 }
   0x2   :  { %v15_v1 = vunpack.c.l.bf16 %v14_v0  ;;  %v62_v24 = vld [vmem:[%s105_s1] ss:$0 sm:$0xff] }
   0x3   :  { %v63_v26 = vld [vmem:[%s106_s2] ss:$0 sm:$0xff] }
   0x4   :  { %v17_v2 = vsel %vm16_vm0, %v15_v1, 0.0 }
   0x5   :  { %18 = vadd.xlane.f32.xlu0 %v17_v2 }
   0x7   :  { %v65_v4 = vpop.eup %64 }
   0x8   :  { %v21_v5 = vmul.f32 32.0, %v65_v4  ;;  %vm25_vm1 = vweird.f32 %v65_v4 }
   0xa   :  { %v22_v6 = vsub.f32 1.0, %v21_v5 }
   0xc   :  { %v23_v7 = vmul.f32 %v65_v4, %v22_v6 }
   0xe   :  { %v24_v8 = vadd.f32 %v65_v4, %v23_v7 }
  0x10   :  { %v26_v9 = vsel %vm25_vm1, %v65_v4, %v24_v8 }
  0x78   :  { %v19_v10 = vpop.xlane.xlu0 %18 }
  0x79   :  { %v27_v11 = vmul.f32 %v26_v9, %v19_v10 }
  0x7b   :  { %v28_v12 = vsub.f32 %v15_v1, %v27_v11 }
  0x7d   :  { %v29_v13 = vmul.f32 %v28_v12, %v28_v12 }
  0x7f   :  { %v30_v14 = vsel %vm16_vm0, %v29_v13, 0.0 }
  0x80   :  { %31 = vadd.xlane.f32.xlu0 %v30_v14 }
  0xf3   :  { %v32_v15 = vpop.xlane.xlu0 %31 }
  0xf4   :  { %v33_v16 = vmul.f32 %v32_v15, %v26_v9 }
  0xf6   :  { %v34_v17 = vadd.f32 1e-06, %v33_v16 }
  0xf8   :  { %66 = vrsqrt.f32 %v34_v17  ;;  %vm41_vm3 = vweird.f32 %v34_v17 }
  0xfe   :  { %v67_v18 = vpop.eup %66 }
  0xff   :  { %v36_v19 = vmul.f32 %v67_v18, %v34_v17  ;;  %vm42_vm2 = vweird.f32 %v67_v18 }
 0x100   :  { %vm43_vm4 = vmor %vm41_vm3, %vm42_vm2 }
 0x101   :  { %v37_v20 = vmul.f32 %v67_v18, %v36_v19 }
 0x103   :  { %v38_v21 = vmul.f32 0.5, %v37_v20 }
 0x105   :  { %v39_v22 = vsub.f32 1.5, %v38_v21 }
 0x107   :  { %v40_v23 = vmul.f32 %v67_v18, %v39_v22 }
 0x109   :  { %v44_v25 = vsel %vm43_vm4, %v67_v18, %v40_v23 }
 0x10a   :  { %v45_v27 = vmul.f32 %v44_v25, %v28_v12 }
 0x10c   :  { %v50_v28 = vmul.f32 %v62_v24, %v45_v27 }
 0x10e   :  { %v55_v29 = vadd.f32 %v63_v26, %v50_v28 }
 0x110   :  { %56 = vst.msk [vmem:[%s107_s3] sm:$0xf] %vm16_vm0, %v55_v29 }

// kernel: _lambda_.21
= control target key start
LH: loop header
LB: loop body
LE: loop exit
PB: predicated region body
PF: predicated region fallthrough
CT: control target
= control target key end

     0   :  { %vm20_vm0 = vcmask 74752   ;;  %s166_s0 = inlined_call_operand.vmem [shape: bf16[2,32], index: 0, kind: input, shape index: {}]   ;;  %s167_s1 = inlined_call_operand.vmem [shape: bf16[32,10], index: 1, kind: input, shape index: {}]   ;;  %s168_s2 = inlined_call_operand.vmem [shape: f32[1,10], index: 2, kind: input, shape index: {}]   ;;  %s169_s3 = inlined_call_operand.hbm [shape: f32[2,10], index: 3, kind: output, shape index: {}]  }
   0x1   :  { %v96_v0 = vld [vmem:[%s167_s1 + $0x8] sm:$0xff] }
   0x2   :  { %8 = vsyncpa [#allocation4], 0  ;;  %50 = vmatpush.bf16.msra.mxu0 %v96_v0  ;;  %v95_v1 = vld [vmem:[%s167_s1] sm:$0xff]  ;;  %v126_v2 = vmov 0.0   ;;  %vm40_vm1 = vcmask 261120   ;;  %s127_s1 = smov [#allocation3]  }
   0x3   :  { %21 = vst.msk [vmem:[#allocation2] sm:$0x3] %vm20_vm0, %v126_v2  ;;  %v23_v3 = vld [vmem:[%s166_s0] sm:$0x1]  ;;  %s75_s20 = sshll.u32 %s127_s1, 4  ;;  %s77_s23 = sshll.u32 %s169_s3, 4  ;;  %s76_s20 = int_to_ptr.vmem [resolvable:$true] %s75_s20  ;;  %s78_s23 = int_to_ptr.hbm [resolvable:$true] %s77_s23 }
   0x4   :  { %v99_v7 = vld [vmem:[%s168_s2] ss:$0 sm:$0xff] }
   0x6   :  { %51 = vmatpush.bf16.msra.mxu0 %v95_v1 }
   0x9   :  { %94 = vmatmul.msk.bf16.vlgmr.msra.gmra.mxu0 %vm40_vm1, %v23_v3 }
   0xa   :  { %v22_v4 = vld [vmem:[#allocation2] sm:$0x3] }
  0x86   :  { %v53_v5 = vpop.f32.mrf.mxu0 }
  0x87   :  { %v57_v6 = vadd.f32 %v53_v5, %v22_v4 }
  0x89   :  { %59 = vst.msk [vmem:[#allocation2] sm:$0x3] %vm20_vm0, %v57_v6 }
  0x8e   :  { %v55_v8 = vpop.f32.mrf.mxu0 }
  0x90   :  { %v63_v9 = vld [vmem:[#allocation2] sm:$0x3] }
  0x91   :  { %v68_v10 = vadd.f32 %v99_v7, %v63_v9 }
  0x93   :  { %69 = vst.msk [vmem:[#allocation3] sm:$0x3] %vm20_vm0, %v68_v10 }
  0x94   :  { %80 = dma.vmem_to_hbm [thread:$0]  %s76_s20, 32, %s78_s23, [#allocation4]  }
  0x95   :  { %124 = dma.done.wait [#allocation4], 32  }
  0x96   :  { %125 = vsyncadd [#allocation4], 4294967264 }
  0x97   :  { %85 = vsyncpa [#allocation4], 1 }

// kernel: _lambda_.15
= control target key start
LH: loop header
LB: loop body
LE: loop exit
PB: predicated region body
PF: predicated region fallthrough
CT: control target
= control target key end

     0   :  { %vm42_vm0 = vcmask 261120   ;;  %v512_v10 = vmov 32.0   ;;  %vm158_vm12 = vcmask 257024   ;;  %s671_s0 = inlined_call_operand.vmem [shape: bf16[32,32], index: 0, kind: input, shape index: {}, may-alias: {0,7}]   ;;  %s672_s1 = inlined_call_operand.vmem [shape: f32[1,32], index: 1, kind: input, shape index: {}]   ;;  %s673_s2 = inlined_call_operand.vmem [shape: f32[1,32], index: 2, kind: input, shape index: {}]   ;;  %s674_s4 = inlined_call_operand.vmem [shape: f32[1,128], index: 4, kind: input, shape index: {}]   ;;  %s675_s3 = inlined_call_operand.vmem [shape: bf16[32,128], index: 3, kind: input, shape index: {}]   ;;  %s676_s6 = inlined_call_operand.vmem [shape: f32[1,32], index: 6, kind: input, shape index: {}]   ;;  %s677_s5 = inlined_call_operand.vmem [shape: bf16[128,32], index: 5, kind: input, shape index: {}]   ;;  %s678_s7 = inlined_call_operand.vmem [shape: bf16[32,32], index: 7, kind: input, shape index: {}, may-alias: {0,7}]   ;;  %s679_s8 = inlined_call_operand.vmem [shape: bf16[32,32], index: 8, kind: output, shape index: {}]  }
   0x1   :  { %v478_v0 = vld [vmem:[%s671_s0 + $0x8] sm:$0xff]   ;;  %v463_v1 = vld [vmem:[%s671_s0] sm:$0xff]   ;;  %494 = vrcp.f32 %v512_v10 }
   0x2   :  { %v468_v2 = vunpack.c.l.bf16 %v478_v0  ;;  %v464_v3 = vunpack.c.l.bf16 %v463_v1  ;;  %v469_v6 = vunpack.c.h.bf16 %v478_v0  ;;  %v465_v7 = vunpack.c.h.bf16 %v463_v1  ;;  %v453_v45 = vld [vmem:[%s675_s3 + $0x8] sm:$0xff]  ;;  %v452_v48 = vld [vmem:[%s675_s3] sm:$0xff] }
   0x3   :  { %214 = vmatpush.bf16.msra.mxu0 %v453_v45  ;;  %v490_v1 = vld [vmem:[%s672_s1] ss:$0 sm:$0xff] }
   0x4   :  { %v49_v4 = vsel %vm42_vm0, %v468_v2, 0.0  ;;  %v43_v5 = vsel %vm42_vm0, %v464_v3, 0.0  ;;  %v52_v8 = vsel %vm42_vm0, %v469_v6, 0.0  ;;  %v46_v9 = vsel %vm42_vm0, %v465_v7, 0.0 }
   0x5   :  { %50 = vadd.xlane.f32.xlu1 %v49_v4  ;;  %44 = vadd.xlane.f32.xlu0 %v43_v5 }
   0x7   :  { %v495_v11 = vpop.eup %494  ;;  %215 = vmatpush.bf16.msra.mxu0 %v452_v48 }
   0x8   :  { %v56_v12 = vmul.f32 32.0, %v495_v11  ;;  %vm60_vm1 = vweird.f32 %v495_v11 }
   0xa   :  { %v57_v13 = vsub.f32 1.0, %v56_v12 }
   0xc   :  { %v58_v14 = vmul.f32 %v495_v11, %v57_v13 }
   0xd   :  { %53 = vadd.xlane.f32.xlu1 %v52_v8  ;;  %47 = vadd.xlane.f32.xlu0 %v46_v9 }
   0xe   :  { %v59_v15 = vadd.f32 %v495_v11, %v58_v14 }
  0x10   :  { %v61_v16 = vsel %vm60_vm1, %v495_v11, %v59_v15 }
  0x78   :  { %v51_v17 = vpop.xlane.xlu1 %50  ;;  %v45_v18 = vpop.xlane.xlu0 %44 }
  0x79   :  { %v64_v19 = vmul.f32 %v61_v16, %v51_v17  ;;  %v62_v20 = vmul.f32 %v61_v16, %v45_v18 }
  0x7b   :  { %v569_v21 = vsub.f32 %v468_v2, %v64_v19  ;;  %v571_v22 = vsub.f32 %v464_v3, %v62_v20 }
  0x7d   :  { %v72_v23 = vmul.f32 %v569_v21, %v569_v21  ;;  %v70_v24 = vmul.f32 %v571_v22, %v571_v22 }
  0x7f   :  { %v80_v25 = vsel %vm42_vm0, %v72_v23, 0.0  ;;  %v74_v26 = vsel %vm42_vm0, %v70_v24, 0.0 }
  0x80   :  { %v54_v27 = vpop.xlane.xlu1 %53  ;;  %81 = vadd.xlane.f32.xlu0 %v80_v25  ;;  %75 = vadd.xlane.f32.xlu2 %v74_v26  ;;  %v48_v28 = vpop.xlane.xlu0 %47 }
  0x81   :  { %v65_v29 = vmul.f32 %v61_v16, %v54_v27  ;;  %v63_v30 = vmul.f32 %v61_v16, %v48_v28 }
  0x83   :  { %v579_v31 = vsub.f32 %v469_v6, %v65_v29  ;;  %v581_v32 = vsub.f32 %v465_v7, %v63_v30  ;;  %v491_v6 = vld [vmem:[%s673_s2] ss:$0 sm:$0xff] }
  0x85   :  { %v73_v33 = vmul.f32 %v579_v31, %v579_v31  ;;  %v71_v34 = vmul.f32 %v581_v32, %v581_v32 }
  0x87   :  { %v83_v35 = vsel %vm42_vm0, %v73_v33, 0.0  ;;  %v77_v36 = vsel %vm42_vm0, %v71_v34, 0.0 }
  0x88   :  { %84 = vadd.xlane.f32.xlu1 %v83_v35  ;;  %78 = vadd.xlane.f32.xlu2 %v77_v36 }
  0xf3   :  { %v76_v37 = vpop.xlane.xlu2 %75  ;;  %v82_v38 = vpop.xlane.xlu0 %81 }
  0xf4   :  { %v86_v39 = vmul.f32 %v76_v37, %v61_v16  ;;  %v88_v40 = vmul.f32 %v82_v38, %v61_v16  ;;  %v459_v37 = vld [vmem:[%s677_s5 + $0x28] sm:$0xff]  ;;  %v458_v38 = vld [vmem:[%s677_s5 + $0x20] sm:$0xff] }
  0xf6   :  { %v90_v41 = vadd.f32 1e-06, %v86_v39  ;;  %v92_v42 = vadd.f32 1e-06, %v88_v40  ;;  %v457_v39 = vld [vmem:[%s677_s5 + $0x18] sm:$0xff]  ;;  %v456_v40 = vld [vmem:[%s677_s5 + $0x10] sm:$0xff] }
  0xf8   :  { %496 = vrsqrt.f32 %v90_v41  ;;  %vm120_vm2 = vweird.f32 %v92_v42  ;;  %vm100_vm5 = vweird.f32 %v90_v41 }
  0xf9   :  { %498 = vrsqrt.f32 %v92_v42 }
  0xfb   :  { %v85_v43 = vpop.xlane.xlu1 %84  ;;  %v79_v44 = vpop.xlane.xlu2 %78 }
  0xfc   :  { %v89_v46 = vmul.f32 %v85_v43, %v61_v16  ;;  %v87_v47 = vmul.f32 %v79_v44, %v61_v16  ;;  %v454_v43 = vld [vmem:[%s677_s5] sm:$0xff] }
  0xfe   :  { %v497_v49 = vpop.eup %496  ;;  %v93_v50 = vadd.f32 1e-06, %v89_v46  ;;  %v91_v51 = vadd.f32 1e-06, %v87_v47 }
  0xff   :  { %v499_v52 = vpop.eup %498  ;;  %v95_v53 = vmul.f32 %v497_v49, %v90_v41  ;;  %vm101_vm4 = vweird.f32 %v497_v49  ;;  %v455_v41 = vld [vmem:[%s677_s5 + $0x8] sm:$0xff] }
 0x100   :  { %v115_v54 = vmul.f32 %v499_v52, %v92_v42  ;;  %500 = vrsqrt.f32 %v93_v50  ;;  %vm121_vm3 = vweird.f32 %v499_v52  ;;  %vm102_vm7 = vmor %vm100_vm5, %vm101_vm4  ;;  %vm130_vm8 = vweird.f32 %v93_v50  ;;  %v492_v42 = vld [vmem:[%s674_s4] ss:$0 sm:$0xff] }
 0x101   :  { %v96_v55 = vmul.f32 %v497_v49, %v95_v53  ;;  %502 = vrsqrt.f32 %v91_v51  ;;  %vm122_vm6 = vmor %vm120_vm2, %vm121_vm3  ;;  %vm110_vm13 = vweird.f32 %v91_v51 }
 0x102   :  { %v116_v56 = vmul.f32 %v499_v52, %v115_v54 }
 0x103   :  { %v97_v57 = vmul.f32 0.5, %v96_v55 }
 0x104   :  { %v117_v58 = vmul.f32 0.5, %v116_v56 }
 0x105   :  { %v98_v59 = vsub.f32 1.5, %v97_v57 }
 0x106   :  { %v501_v60 = vpop.eup %500  ;;  %v118_v61 = vsub.f32 1.5, %v117_v58 }
 0x107   :  { %v503_v62 = vpop.eup %502  ;;  %v99_v63 = vmul.f32 %v497_v49, %v98_v59  ;;  %v125_v0 = vmul.f32 %v501_v60, %v93_v50  ;;  %vm131_vm9 = vweird.f32 %v501_v60 }
 0x108   :  { %v119_v2 = vmul.f32 %v499_v52, %v118_v61  ;;  %v105_v3 = vmul.f32 %v503_v62, %v91_v51  ;;  %vm132_vm10 = vmor %vm130_vm8, %vm131_vm9  ;;  %vm111_vm11 = vweird.f32 %v503_v62 }
 0x109   :  { %v103_v4 = vsel %vm102_vm7, %v497_v49, %v99_v63  ;;  %v126_v5 = vmul.f32 %v501_v60, %v125_v0  ;;  %vm112_vm14 = vmor %vm110_vm13, %vm111_vm11  ;;  %v513_v63 = vmov 0.0  }
 0x10a   :  { %v134_v7 = vmul.f32 %v103_v4, %v571_v22  ;;  %v123_v8 = vsel %vm122_vm6, %v499_v52, %v119_v2  ;;  %v106_v9 = vmul.f32 %v503_v62, %v105_v3  ;;  %163 = vst.msk [vmem:[#allocation3] sm:$0xff] %vm42_vm0, %v513_v63 }
 0x10b   :  { %v136_v10 = vmul.f32 %v123_v8, %v569_v21  ;;  %v127_v11 = vmul.f32 0.5, %v126_v5  ;;  %164 = vst.msk [vmem:[#allocation3 + $0x8] sm:$0xff] %vm42_vm0, %v513_v63 }
 0x10c   :  { %v142_v12 = vmul.f32 %v490_v1, %v134_v7  ;;  %v107_v13 = vmul.f32 0.5, %v106_v9  ;;  %165 = vst.msk [vmem:[#allocation3 + $0x10] sm:$0xff] %vm42_vm0, %v513_v63 }
 0x10d   :  { %v144_v14 = vmul.f32 %v490_v1, %v136_v10  ;;  %v128_v15 = vsub.f32 1.5, %v127_v11  ;;  %166 = vst.msk [vmem:[#allocation3 + $0x18] sm:$0xff] %vm42_vm0, %v513_v63 }
 0x10e   :  { %v150_v16 = vadd.f32 %v491_v6, %v142_v12  ;;  %v108_v17 = vsub.f32 1.5, %v107_v13 }
 0x10f   :  { %v152_v18 = vadd.f32 %v491_v6, %v144_v14  ;;  %v129_v19 = vmul.f32 %v501_v60, %v128_v15 }
 0x110   :  { %v154_v20 = vpack.c.bf16 %v150_v16, %v150_v16  ;;  %v109_v22 = vmul.f32 %v503_v62, %v108_v17 }
 0x111   :  { %v156_v23 = vpack.c.bf16 %v152_v18, %v152_v18  ;;  %v133_v24 = vsel %vm132_vm10, %v501_v60, %v129_v19 }
 0x112   :  { %159 = vst.msk [vmem:[#allocation2] sm:$0xf] %vm158_vm12, %v154_v20  ;;  %v137_v21 = vmul.f32 %v133_v24, %v579_v31  ;;  %v113_v25 = vsel %vm112_vm14, %v503_v62, %v109_v22  ;;  %v461_v31 = vld [vmem:[%s677_s5 + $0x38] sm:$0xff] }
 0x113   :  { %161 = vst.msk [vmem:[#allocation2 + $0x8] sm:$0xf] %vm158_vm12, %v156_v23  ;;  %v135_v26 = vmul.f32 %v113_v25, %v581_v32  ;;  %333 = vmatpush.bf16.msra.mxu1 %v461_v31  ;;  %480 = vmatpush.bf16.msra.mxu2 %v461_v31  ;;  %v460_v32 = vld [vmem:[%s677_s5 + $0x30] sm:$0xff] }
 0x114   :  { %v145_v27 = vmul.f32 %v490_v1, %v137_v21 }
 0x115   :  { %v143_v28 = vmul.f32 %v490_v1, %v135_v26 }
 0x116   :  { %v153_v29 = vadd.f32 %v491_v6, %v145_v27  ;;  %v263_v27 = vld [vmem:[#allocation3] sm:$0xff] }
 0x117   :  { %v151_v30 = vadd.f32 %v491_v6, %v143_v28  ;;  %334 = vmatpush.bf16.msra.mxu1 %v460_v32  ;;  %481 = vmatpush.bf16.msra.mxu2 %v460_v32 }
 0x118   :  { %v157_v33 = vpack.c.bf16 %v153_v29, %v153_v29 }
 0x119   :  { %v155_v34 = vpack.c.bf16 %v151_v30, %v151_v30  ;;  %v471_v30 = vld [vmem:[%s678_s7] sm:$0xff]  }
 0x11a   :  { %162 = vst.msk [vmem:[#allocation2 + $0xc] sm:$0xf] %vm158_vm12, %v157_v33  ;;  %v264_v33 = vld [vmem:[#allocation3 + $0x8] sm:$0xff] }
 0x11b   :  { %160 = vst.msk [vmem:[#allocation2 + $0x4] sm:$0xf] %vm158_vm12, %v155_v34  ;;  %335 = vmatpush.bf16.msra.mxu1 %v459_v37  ;;  %482 = vmatpush.bf16.msra.mxu2 %v459_v37  ;;  %v493_v34 = vld [vmem:[%s676_s6] ss:$0 sm:$0xff] }
 0x11f   :  { %336 = vmatpush.bf16.msra.mxu1 %v458_v38  ;;  %483 = vmatpush.bf16.msra.mxu2 %v458_v38 }
 0x121   :  { %v451_v36 = vld [vmem:[#allocation2 + $0x8] sm:$0xff] }
 0x122   :  { %v450_v35 = vld [vmem:[#allocation2] sm:$0xff] }
 0x123   :  { %416 = vmatmul.msk.bf16.vlgmr.msra.gmra.mxu0 %vm42_vm0, %v450_v35  ;;  %337 = vmatpush.bf16.msra.mxu1 %v457_v39 }
 0x124   :  { %484 = vmatpush.bf16.msra.mxu2 %v457_v39 }
 0x127   :  { %338 = vmatpush.bf16.msra.mxu1 %v456_v40 }
 0x128   :  { %485 = vmatpush.bf16.msra.mxu2 %v456_v40  ;;  %v473_v40 = vunpack.c.h.bf16 %v471_v30 }
 0x12b   :  { %339 = vmatpush.bf16.msra.mxu1 %v455_v41 }
 0x12c   :  { %486 = vmatpush.bf16.msra.mxu2 %v455_v41 }
 0x12f   :  { %340 = vmatpush.bf16.msra.mxu1 %v454_v43 }
 0x130   :  { %487 = vmatpush.bf16.msra.mxu2 %v454_v43  ;;  %v265_v43 = vld [vmem:[#allocation3 + $0x10] sm:$0xff] }
 0x133   :  { %417 = vmatmul.msk.bf16.gmra.mxu0 %vm42_vm0, %v451_v36  ;;  %v472_v36 = vunpack.c.l.bf16 %v471_v30 }
 0x1a0   :  { %v217_v44 = vpop.f32.mrf.mxu0 }
 0x1a1   :  { %v218_v45 = vadd.f32 %v492_v42, %v217_v44 }
 0x1a3   :  { %v227_v46 = vmul.f32 %v218_v45, %v218_v45 }
 0x1a5   :  { %v231_v47 = vmul.f32 %v227_v46, %v218_v45 }
 0x1a7   :  { %v235_v48 = vmul.f32 0.044715, %v231_v47 }
 0x1a8   :  { %v219_v49 = vpop.f32.mrf.mxu0 }
 0x1a9   :  { %v239_v50 = vadd.f32 %v235_v48, %v218_v45  ;;  %v220_v51 = vadd.f32 %v492_v42, %v219_v49  ;;  %v266_v48 = vld [vmem:[#allocation3 + $0x18] sm:$0xff] }
 0x1aa   :  { %v479_v49 = vld [vmem:[%s678_s7 + $0x8] sm:$0xff]  }
 0x1ab   :  { %v228_v52 = vmul.f32 %v220_v51, %v220_v51  ;;  %v243_v53 = vmul.f32 0.7978846, %v239_v50 }
 0x1ad   :  { %v232_v54 = vmul.f32 %v228_v52, %v220_v51  ;;  %504 = vtanh.f32 %v243_v53  ;;  %v476_v52 = vunpack.c.l.bf16 %v479_v49 }
 0x1af   :  { %v236_v55 = vmul.f32 0.044715, %v232_v54 }
 0x1b0   :  { %v222_v56 = vpop.f32.mrf.mxu0 }
 0x1b1   :  { %v240_v57 = vadd.f32 %v236_v55, %v220_v51  ;;  %v223_v58 = vadd.f32 %v492_v42, %v222_v56 }
 0x1b3   :  { %v229_v59 = vmul.f32 %v223_v58, %v223_v58  ;;  %v244_v60 = vmul.f32 0.7978846, %v240_v57  ;;  %v505_v61 = vpop.eup %504  ;;  %v477_v57 = vunpack.c.h.bf16 %v479_v49 }
 0x1b4   :  { %v251_v2 = vadd.f32 1.0, %v505_v61 }
 0x1b5   :  { %v233_v62 = vmul.f32 %v229_v59, %v223_v58  ;;  %506 = vtanh.f32 %v244_v60 }
 0x1b6   :  { %v255_v9 = vmul.f32 0.5, %v251_v2 }
 0x1b7   :  { %v237_v0 = vmul.f32 0.044715, %v233_v62 }
 0x1b8   :  { %v224_v1 = vpop.f32.mrf.mxu0  ;;  %v259_v13 = vmul.f32 %v255_v9, %v218_v45 }
 0x1b9   :  { %v241_v3 = vadd.f32 %v237_v0, %v223_v58  ;;  %v225_v4 = vadd.f32 %v492_v42, %v224_v1 }
 0x1bb   :  { %v507_v5 = vpop.eup %506  ;;  %v230_v6 = vmul.f32 %v225_v4, %v225_v4  ;;  %v245_v7 = vmul.f32 0.7978846, %v241_v3 }
 0x1bc   :  { %v252_v8 = vadd.f32 1.0, %v507_v5 }
 0x1bd   :  { %v234_v10 = vmul.f32 %v230_v6, %v225_v4  ;;  %508 = vtanh.f32 %v245_v7 }
 0x1be   :  { %v256_v11 = vmul.f32 0.5, %v252_v8 }
 0x1bf   :  { %v238_v12 = vmul.f32 0.044715, %v234_v10 }
 0x1c0   :  { %v260_v14 = vmul.f32 %v256_v11, %v220_v51 }
 0x1c1   :  { %v242_v15 = vadd.f32 %v238_v12, %v225_v4 }
 0x1c2   :  { %v267_v16 = vpack.c.bf16 %v260_v14, %v259_v13 }
 0x1c3   :  { %v246_v17 = vmul.f32 0.7978846, %v242_v15  ;;  %v509_v18 = vpop.eup %508 }
 0x1c4   :  { %341 = vmatmul.bf16.vlgmr.msra.gmra.mxu1 %v267_v16  ;;  %v253_v19 = vadd.f32 1.0, %v509_v18 }
 0x1c5   :  { %510 = vtanh.f32 %v246_v17 }
 0x1c6   :  { %v257_v23 = vmul.f32 0.5, %v253_v19 }
 0x1c8   :  { %v261_v21 = vmul.f32 %v257_v23, %v223_v58 }
 0x1cb   :  { %v511_v20 = vpop.eup %510 }
 0x1cc   :  { %v254_v22 = vadd.f32 1.0, %v511_v20 }
 0x1ce   :  { %v258_v24 = vmul.f32 0.5, %v254_v22 }
 0x1d0   :  { %v262_v25 = vmul.f32 %v258_v24, %v225_v4 }
 0x1d2   :  { %v268_v26 = vpack.c.bf16 %v262_v25, %v261_v21 }
 0x1d4   :  { %346 = vmatmul.bf16.vlgmr.msra.gmra.mxu2 %v268_v26 }
 0x241   :  { %v342_v28 = vpop.f32.mrf.mxu1 }
 0x242   :  { %v352_v29 = vadd.f32 %v342_v28, %v263_v27 }
 0x244   :  { %356 = vst.msk [vmem:[#allocation3] sm:$0xff] %vm42_vm0, %v352_v29 }
 0x249   :  { %v344_v35 = vpop.f32.mrf.mxu1 }
 0x24a   :  { %v353_v31 = vadd.f32 %v344_v35, %v264_v33 }
 0x24b   :  { %v363_v32 = vld [vmem:[#allocation3] sm:$0xff] }
 0x24c   :  { %v371_v37 = vadd.f32 %v493_v34, %v363_v32  ;;  %357 = vst.msk [vmem:[#allocation3 + $0x8] sm:$0xff] %vm42_vm0, %v353_v31 }
 0x24e   :  { %v383_v38 = vadd.f32 %v472_v36, %v371_v37 }
 0x250   :  { %v387_v39 = vpack.c.bf16 %v383_v38, %v383_v38 }
 0x252   :  { %392 = vst.msk [vmem:[%s679_s8] sm:$0xf] %vm158_vm12, %v387_v39 }
 0x253   :  { %v364_v41 = vld [vmem:[#allocation3 + $0x8] sm:$0xff] }
 0x254   :  { %v372_v42 = vadd.f32 %v493_v34, %v364_v41 }
 0x256   :  { %v384_v44 = vadd.f32 %v473_v40, %v372_v42 }
 0x257   :  { %v347_v45 = vpop.f32.mrf.mxu2 }
 0x258   :  { %v388_v46 = vpack.c.bf16 %v384_v44, %v384_v44  ;;  %v354_v47 = vadd.f32 %v347_v45, %v265_v43 }
 0x25a   :  { %393 = vst.msk [vmem:[%s679_s8 + $0x4] sm:$0xf] %vm158_vm12, %v388_v46 }
 0x25b   :  { %358 = vst.msk [vmem:[#allocation3 + $0x10] sm:$0xff] %vm42_vm0, %v354_v47 }
 0x25f   :  { %v349_v50 = vpop.f32.mrf.mxu2 }
 0x260   :  { %v355_v51 = vadd.f32 %v349_v50, %v266_v48 }
 0x262   :  { %v365_v53 = vld [vmem:[#allocation3 + $0x10] sm:$0xff]  ;;  %359 = vst.msk [vmem:[#allocation3 + $0x18] sm:$0xff] %vm42_vm0, %v355_v51 }
 0x263   :  { %v373_v54 = vadd.f32 %v493_v34, %v365_v53 }
 0x265   :  { %v385_v55 = vadd.f32 %v476_v52, %v373_v54 }
 0x267   :  { %v389_v56 = vpack.c.bf16 %v385_v55, %v385_v55 }
 0x269   :  { %394 = vst.msk [vmem:[%s679_s8 + $0x8] sm:$0xf] %vm158_vm12, %v389_v56  ;;  %v366_v58 = vld [vmem:[#allocation3 + $0x18] sm:$0xff] }
 0x26a   :  { %v374_v59 = vadd.f32 %v493_v34, %v366_v58 }
 0x26c   :  { %v386_v60 = vadd.f32 %v477_v57, %v374_v59 }
 0x26e   :  { %v390_v61 = vpack.c.bf16 %v386_v60, %v386_v60 }
 0x270   :  { %395 = vst.msk [vmem:[%s679_s8 + $0xc] sm:$0xf] %vm158_vm12, %v390_v61 }

</bundles_post_ra>
